<compile_context>
chip_gen: v5e
topology: v5e:2x2
jax: 0.10.0
libtpu: 0.0.40
codegen_flags: <defaults>
</compile_context>

<pallas_src>
import jax
import jax.numpy as jnp
from jax.experimental import pallas as pl
from jax.experimental.pallas import tpu as pltpu

IN_FEATURES = 28 * 28          # 784 (multiple of 8 -> legal sublane dim for w1)
HIDDEN = 512
N_CLASSES = 10
N_PAD = 128                    # lane-dense class padding
NEG_BIG = -1e30                # exp() of padded logits underflows to exactly 0


def mnist_mlp_kernel(x_ref, w1_ref, b1_ref, w2_ref, b2_ref, w3_ref, b3_ref, o_ref):
    # x arrives as f32 straight from HBM; cast to bf16 on the VPU right before
    # the MXU matmul (f32 accumulation).  K = 784 is a legal MXU contraction.
    x = x_ref[...].astype(jnp.bfloat16)
    # fc1 + relu
    h1 = jnp.dot(x, w1_ref[...], preferred_element_type=jnp.float32)
    h1 = jnp.maximum(h1 + b1_ref[...], 0.0)
    # fc2 + relu
    h2 = jnp.dot(h1.astype(jnp.bfloat16), w2_ref[...],
                 preferred_element_type=jnp.float32)
    h2 = jnp.maximum(h2 + b2_ref[...], 0.0)
    # fc3 + softmax over the class-padded, lane-dense last axis.  Padded
    # columns carry a -1e30 bias so they contribute exactly 0 to the sum.
    logits = jnp.dot(h2.astype(jnp.bfloat16), w3_ref[...],
                     preferred_element_type=jnp.float32) + b3_ref[...]
    m = jnp.max(logits, axis=-1, keepdims=True)
    e = jnp.exp(logits - m)
    # exact reciprocal (still on the EUP; effectively free under the MXU work)
    inv = pl.reciprocal(jnp.sum(e, axis=-1, keepdims=True), approx=False)
    o_ref[...] = (e * inv).astype(o_ref.dtype)


def _round_up(x, m):
    return pl.cdiv(x, m) * m


def _pick_batch_tile(B):
    # Small-batch path: right-size the tile (16-row bf16/MXU alignment) so we
    # don't burn >95% of the MXU work and DMA on zero-padded rows.
    if B <= 256:
        return max(16, _round_up(B, 16))
    # Large batches: big tiles amortize the per-grid-step overhead, but keep
    # at least 2 grid steps so both v7x TensorCores get work.
    tile = 256
    for cand in (512, 1024):
        if _round_up(B, cand) // cand >= 2:
            tile = cand
    return tile


def mnist_forward(x, params, *, batch_tile=None):
    """x: (B, 1, 28, 28) or (B, 784); returns softmax probs (B, 10) in f32.

    Precision note: bf16 weights/activations with f32 accumulation and a bf16
    output writeback -- ample for MNIST classification (abs error ~1e-2)."""
    x = x.reshape(-1, IN_FEATURES).astype(jnp.float32)   # x.view(-1, 784)
    B = x.shape[0]
    w1, b1, w2, b2, w3, b3 = params

    if batch_tile is None:
        batch_tile = _pick_batch_tile(B)
    B_pad = _round_up(B, batch_tile)
    # Only a batch-row pad: no K pad and no bf16 copy of x materialized in HBM.
    x_p = x if B_pad == B else jnp.pad(x, ((0, B_pad - B), (0, 0)))

    w1_p = w1.astype(jnp.bfloat16)
    w2_p = w2.astype(jnp.bfloat16)
    w3_p = jnp.pad(w3, ((0, 0), (0, N_PAD - N_CLASSES))).astype(jnp.bfloat16)
    b1_p = b1.astype(jnp.float32)
    b2_p = b2.astype(jnp.float32)
    b3_p = jnp.pad(b3.astype(jnp.float32), ((0, 0), (0, N_PAD - N_CLASSES)),
                   constant_values=NEG_BIG)

    grid = (B_pad // batch_tile,)

    # Grid-invariant weights/biases: constant index_map, single VMEM buffer
    # (drops the dead second copy of the default double-buffer).
    def const(shape):
        return pl.BlockSpec(shape, lambda i: (0, 0), pipeline_mode=pl.Buffered(1))

    flops = 2 * B_pad * (IN_FEATURES * HIDDEN + HIDDEN * HIDDEN + HIDDEN * N_PAD)
    bytes_accessed = (x_p.size * 4
                      + (w1_p.size + w2_p.size + w3_p.size) * 2
                      + (b1_p.size + b2_p.size + b3_p.size) * 4
                      + B_pad * N_PAD * 2)
    cost = pl.CostEstimate(flops=flops, transcendentals=B_pad * N_PAD,
                           bytes_accessed=bytes_accessed)

    out = pl.pallas_call(
        mnist_mlp_kernel,
        out_shape=jax.ShapeDtypeStruct((B_pad, N_PAD), jnp.bfloat16),
        grid_spec=pltpu.PrefetchScalarGridSpec(
            num_scalar_prefetch=0,
            grid=grid,
            in_specs=[
                # x tile: full 784 last dim (== array dim, so legal), f32.
                pl.BlockSpec((batch_tile, IN_FEATURES), lambda i: (i, 0)),
                const((IN_FEATURES, HIDDEN)),   # w1
                const((1, HIDDEN)),             # b1
                const((HIDDEN, HIDDEN)),        # w2
                const((1, HIDDEN)),             # b2
                const((HIDDEN, N_PAD)),         # w3 (class-padded)
                const((1, N_PAD)),              # b3 (class-padded with -1e30)
            ],
            out_specs=pl.BlockSpec((batch_tile, N_PAD), lambda i: (i, 0)),
        ),
        compiler_params=pltpu.CompilerParams(
            dimension_semantics=("parallel",),
            vmem_limit_bytes=32 * 1024 * 1024,
        ),
        cost_estimate=cost,
    )(x_p, w1_p, b1_p, w2_p, b2_p, w3_p, b3_p)

    # Padded rows (beyond :B) hold uniform-softmax garbage by construction;
    # they are sliced away here and must not be read by callers.
    return out[:B, :N_CLASSES].astype(jnp.float32)


def mnist_forward_ref(x, params):
    """Pure-JAX f32 reference of the PyTorch forward."""
    x = x.reshape(-1, IN_FEATURES).astype(jnp.float32)
    w1, b1, w2, b2, w3, b3 = params
    h1 = jax.nn.relu(x @ w1 + b1)
    h2 = jax.nn.relu(h1 @ w2 + b2)
    return jax.nn.softmax(h2 @ w3 + b3, axis=-1)


def init_params(key):
    """Deterministic init mimicking torch.nn.Linear (uniform +-1/sqrt(fan_in)).
    Weights are returned transposed to (in, out) for the x @ W kernel layout."""
    sizes = [(IN_FEATURES, HIDDEN), (HIDDEN, HIDDEN), (HIDDEN, N_CLASSES)]
    params = []
    for fan_in, fan_out in sizes:
        kw, kb, key = jax.random.split(key, 3)
        bound = 1.0 / (fan_in ** 0.5)
        # torch stores (out, in); generate that way, then transpose for x @ W
        w = jax.random.uniform(kw, (fan_out, fan_in), jnp.float32, -bound, bound).T
        b = jax.random.uniform(kb, (1, fan_out), jnp.float32, -bound, bound)
        params += [w, b]
    return tuple(params)


if __name__ == "__main__":
    key = jax.random.PRNGKey(0)
    kx, kp = jax.random.split(key)

    # Small batch of MNIST-shaped inputs (NCHW, as PyTorch would feed them).
    x = jax.random.normal(kx, (8, 1, 28, 28), jnp.float32)
    params = init_params(kp)

    out = mnist_forward(x, params)
    out = jax.block_until_ready(out)

    # Sanity: shape, softmax rows sum to ~1, and matches the f32 reference
    # within bf16 tolerance.
    assert out.shape == (8, 10)
    assert bool(jnp.all(jnp.abs(jnp.sum(out, axis=1) - 1.0) < 1e-2))
    ref = mnist_forward_ref(x, params)
    assert bool(jnp.max(jnp.abs(out - ref)) < 5e-2)

    print("KERNEL_OK")
</pallas_src>

<mosaic_0001>
module attributes {stable_mosaic.version = 11 : i64} {
  func.func @mnist_mlp_kernel(%arg0: i32, %arg1: memref<16x784xf32, #tpu.memory_space<vmem>>, %arg2: memref<784x512xbf16, #tpu.memory_space<vmem>>, %arg3: memref<1x512xf32, #tpu.memory_space<vmem>>, %arg4: memref<512x512xbf16, #tpu.memory_space<vmem>>, %arg5: memref<1x512xf32, #tpu.memory_space<vmem>>, %arg6: memref<512x128xbf16, #tpu.memory_space<vmem>>, %arg7: memref<1x128xf32, #tpu.memory_space<vmem>>, %arg8: memref<16x128xbf16, #tpu.memory_space<vmem>>) attributes {dimension_semantics = [#tpu.dimension_semantics<parallel>], iteration_bounds = array<i64: 1>, scalar_prefetch = 0 : i64, scratch_operands = 0 : i64, tpu.core_type = #tpu.core_type<tc>, window_params = [{transform_indices = @transform_0, window_bounds = array<i64: 16, 784>}, {pipeline_mode = #tpu.pipeline_mode<synchronous>, transform_indices = @transform_1, window_bounds = array<i64: 784, 512>}, {pipeline_mode = #tpu.pipeline_mode<synchronous>, transform_indices = @transform_2, window_bounds = array<i64: 1, 512>}, {pipeline_mode = #tpu.pipeline_mode<synchronous>, transform_indices = @transform_3, window_bounds = array<i64: 512, 512>}, {pipeline_mode = #tpu.pipeline_mode<synchronous>, transform_indices = @transform_4, window_bounds = array<i64: 1, 512>}, {pipeline_mode = #tpu.pipeline_mode<synchronous>, transform_indices = @transform_5, window_bounds = array<i64: 512, 128>}, {pipeline_mode = #tpu.pipeline_mode<synchronous>, transform_indices = @transform_6, window_bounds = array<i64: 1, 128>}, {transform_indices = @transform_7, window_bounds = array<i64: 16, 128>}]} {
    %c0 = arith.constant 0 : index
    %c0_0 = arith.constant 0 : index
    %0 = vector.load %arg1[%c0, %c0_0] : memref<16x784xf32, #tpu.memory_space<vmem>>, vector<16x784xf32>
    %1 = arith.truncf %0 : vector<16x784xf32> to vector<16x784xbf16>
    %c0_1 = arith.constant 0 : index
    %c0_2 = arith.constant 0 : index
    %2 = vector.load %arg2[%c0_1, %c0_2] : memref<784x512xbf16, #tpu.memory_space<vmem>>, vector<784x512xbf16>
    %cst = arith.constant dense<0.000000e+00> : vector<16x512xf32>
    %3 = tpu.matmul %1, %2, %cst {dimension_numbers = #tpu.dot_dimension_numbers<[1], [0], [0], [1], [0, 0, 1, 1], [], []>} : vector<16x784xbf16>, vector<784x512xbf16>, vector<16x512xf32> -> vector<16x512xf32>
    %c0_3 = arith.constant 0 : index
    %c0_4 = arith.constant 0 : index
    %4 = vector.load %arg3[%c0_3, %c0_4] : memref<1x512xf32, #tpu.memory_space<vmem>>, vector<1x512xf32>
    %5 = vector.broadcast %4 : vector<1x512xf32> to vector<16x512xf32>
    %6 = arith.addf %3, %5 : vector<16x512xf32>
    %cst_5 = arith.constant 0.000000e+00 : f32
    %7 = vector.broadcast %cst_5 : f32 to vector<16x512xf32>
    %8 = arith.maximumf %6, %7 : vector<16x512xf32>
    %9 = arith.truncf %8 : vector<16x512xf32> to vector<16x512xbf16>
    %c0_6 = arith.constant 0 : index
    %c0_7 = arith.constant 0 : index
    %10 = vector.load %arg4[%c0_6, %c0_7] : memref<512x512xbf16, #tpu.memory_space<vmem>>, vector<512x512xbf16>
    %cst_8 = arith.constant dense<0.000000e+00> : vector<16x512xf32>
    %11 = tpu.matmul %9, %10, %cst_8 {dimension_numbers = #tpu.dot_dimension_numbers<[1], [0], [0], [1], [0, 0, 1, 1], [], []>} : vector<16x512xbf16>, vector<512x512xbf16>, vector<16x512xf32> -> vector<16x512xf32>
    %c0_9 = arith.constant 0 : index
    %c0_10 = arith.constant 0 : index
    %12 = vector.load %arg5[%c0_9, %c0_10] : memref<1x512xf32, #tpu.memory_space<vmem>>, vector<1x512xf32>
    %13 = vector.broadcast %12 : vector<1x512xf32> to vector<16x512xf32>
    %14 = arith.addf %11, %13 : vector<16x512xf32>
    %cst_11 = arith.constant 0.000000e+00 : f32
    %15 = vector.broadcast %cst_11 : f32 to vector<16x512xf32>
    %16 = arith.maximumf %14, %15 : vector<16x512xf32>
    %17 = arith.truncf %16 : vector<16x512xf32> to vector<16x512xbf16>
    %c0_12 = arith.constant 0 : index
    %c0_13 = arith.constant 0 : index
    %18 = vector.load %arg6[%c0_12, %c0_13] : memref<512x128xbf16, #tpu.memory_space<vmem>>, vector<512x128xbf16>
    %cst_14 = arith.constant dense<0.000000e+00> : vector<16x128xf32>
    %19 = tpu.matmul %17, %18, %cst_14 {dimension_numbers = #tpu.dot_dimension_numbers<[1], [0], [0], [1], [0, 0, 1, 1], [], []>} : vector<16x512xbf16>, vector<512x128xbf16>, vector<16x128xf32> -> vector<16x128xf32>
    %c0_15 = arith.constant 0 : index
    %c0_16 = arith.constant 0 : index
    %20 = vector.load %arg7[%c0_15, %c0_16] : memref<1x128xf32, #tpu.memory_space<vmem>>, vector<1x128xf32>
    %21 = vector.broadcast %20 : vector<1x128xf32> to vector<16x128xf32>
    %22 = arith.addf %19, %21 : vector<16x128xf32>
    %cst_17 = arith.constant dense<0xFF800000> : vector<16xf32>
    %23 = vector.multi_reduction <maximumf>, %22, %cst_17 [1] : vector<16x128xf32> to vector<16xf32>
    %24 = vector.shape_cast %23 : vector<16xf32> to vector<16x1xf32>
    %25 = vector.broadcast %24 : vector<16x1xf32> to vector<16x128xf32>
    %26 = arith.subf %22, %25 : vector<16x128xf32>
    %27 = math.exp %26 : vector<16x128xf32>
    %cst_18 = arith.constant dense<0.000000e+00> : vector<16xf32>
    %28 = vector.multi_reduction <add>, %27, %cst_18 [1] : vector<16x128xf32> to vector<16xf32>
    %29 = vector.shape_cast %28 : vector<16xf32> to vector<16x1xf32>
    %30 = tpu.reciprocal %29 : vector<16x1xf32> -> vector<16x1xf32>
    %31 = vector.broadcast %30 : vector<16x1xf32> to vector<16x128xf32>
    %32 = arith.mulf %27, %31 : vector<16x128xf32>
    %33 = arith.truncf %32 : vector<16x128xf32> to vector<16x128xbf16>
    %c0_19 = arith.constant 0 : index
    %c0_20 = arith.constant 0 : index
    %34 = vector.load %arg8[%c0_19, %c0_20] : memref<16x128xbf16, #tpu.memory_space<vmem>>, vector<16x128xbf16>
    tpu.vector_store %arg8[%c0_19, %c0_20], %33 {strides = array<i32>} : memref<16x128xbf16, #tpu.memory_space<vmem>>, vector<16x128xbf16>,
    return
  }
  func.func @transform_0(%arg0: i32) -> (i32, i32) {
    %c0_i32 = arith.constant 0 : i32
    %c0_i32_0 = arith.constant 0 : i32
    return %arg0, %c0_i32 : i32, i32
  }
  func.func @transform_1(%arg0: i32) -> (i32, i32) {
    %c0_i32 = arith.constant 0 : i32
    %c0_i32_0 = arith.constant 0 : i32
    %c0_i32_1 = arith.constant 0 : i32
    return %c0_i32, %c0_i32_0 : i32, i32
  }
  func.func @transform_2(%arg0: i32) -> (i32, i32) {
    %c0_i32 = arith.constant 0 : i32
    %c0_i32_0 = arith.constant 0 : i32
    %c0_i32_1 = arith.constant 0 : i32
    return %c0_i32, %c0_i32_0 : i32, i32
  }
  func.func @transform_3(%arg0: i32) -> (i32, i32) {
    %c0_i32 = arith.constant 0 : i32
    %c0_i32_0 = arith.constant 0 : i32
    %c0_i32_1 = arith.constant 0 : i32
    return %c0_i32, %c0_i32_0 : i32, i32
  }
  func.func @transform_4(%arg0: i32) -> (i32, i32) {
    %c0_i32 = arith.constant 0 : i32
    %c0_i32_0 = arith.constant 0 : i32
    %c0_i32_1 = arith.constant 0 : i32
    return %c0_i32, %c0_i32_0 : i32, i32
  }
  func.func @transform_5(%arg0: i32) -> (i32, i32) {
    %c0_i32 = arith.constant 0 : i32
    %c0_i32_0 = arith.constant 0 : i32
    %c0_i32_1 = arith.constant 0 : i32
    return %c0_i32, %c0_i32_0 : i32, i32
  }
  func.func @transform_6(%arg0: i32) -> (i32, i32) {
    %c0_i32 = arith.constant 0 : i32
    %c0_i32_0 = arith.constant 0 : i32
    %c0_i32_1 = arith.constant 0 : i32
    return %c0_i32, %c0_i32_0 : i32, i32
  }
  func.func @transform_7(%arg0: i32) -> (i32, i32) {
    %c0_i32 = arith.constant 0 : i32
    %c0_i32_0 = arith.constant 0 : i32
    return %arg0, %c0_i32 : i32, i32
  }
}

</mosaic_0001>

<bundles_post_ra>
// kernel: tpu_custom_call.1
= control target key start
LH: loop header
LB: loop body
LE: loop exit
PB: predicated region body
PF: predicated region fallthrough
CT: control target
= control target key end

     0   :  { %12 = vsyncpa [#allocation3], 0  ;;  %s5308_s0 = inlined_call_operand.hbm [shape: f32[16,784], index: 0, kind: input, shape index: {}]   ;;  %s5309_s1 = inlined_call_operand.hbm [shape: bf16[784,512], index: 1, kind: input, shape index: {}]   ;;  %s5310_s2 = inlined_call_operand.hbm [shape: f32[1,512], index: 2, kind: input, shape index: {}]   ;;  %s5311_s3 = inlined_call_operand.hbm [shape: bf16[512,512], index: 3, kind: input, shape index: {}]   ;;  %s5312_s4 = inlined_call_operand.hbm [shape: f32[1,512], index: 4, kind: input, shape index: {}]   ;;  %s5313_s5 = inlined_call_operand.hbm [shape: bf16[512,128], index: 5, kind: input, shape index: {}]   ;;  %s5314_s6 = inlined_call_operand.vmem [shape: f32[1,128], index: 6, kind: input, shape index: {}]   ;;  %s5315_s7 = inlined_call_operand.hbm [shape: bf16[16,128], index: 7, kind: output, shape index: {}]  }
   0x1   :  { %13 = vsyncpa [#allocation6], 0 }
   0x2   :  { %14 = vsyncpa [#allocation9], 0 }
   0x3   :  { %15 = vsyncpa [#allocation12], 0  ;;  %s34_s26 = sshll.u32 %s5309_s1, 4  ;;  %s35_s26 = int_to_ptr.hbm [resolvable:$true] %s34_s26 }
   0x4   :  { %16 = vsyncpa [#allocation4], 0  ;;  %s5122_s27 = smov [#allocation5]   ;;  %s58_s8 = sshll.u32 %s5311_s3, 4  ;;  %s59_s8 = int_to_ptr.hbm [resolvable:$true] %s58_s8 }
   0x5   :  { %s36_s28 = sshll.u32 %s5122_s27, 4  ;;  %s5123_s9 = smov 256   ;;  %s37_s28 = int_to_ptr.vmem [resolvable:$true] %s36_s28 }
   0x6   :  { %s5124_s10 = smov 16   ;;  %s5125_s11 = smov [#allocation8]  }
   0x7   :  { %42 = dma.hbm_to_vmem [thread:$0]  %s35_s26, 25088, %s37_s28, [#allocation6], %s5123_s9, %s5123_s9, %s5124_s10  }
   0x8   :  { %s60_s12 = sshll.u32 %s5125_s11, 4  ;;  %s21_s15 = sshll.u32 %s5308_s0, 4  ;;  %s61_s12 = int_to_ptr.vmem [resolvable:$true] %s60_s12  ;;  %s22_s15 = int_to_ptr.hbm [resolvable:$true] %s21_s15 }
   0x9   :  { %66 = dma.hbm_to_vmem [thread:$0]  %s59_s8, 16384, %s61_s12, [#allocation9], %s5123_s9, %s5123_s9, %s5124_s10  }
   0xa   :  { %s5126_s1 = smov [#allocation2]   ;;  %s48_s3 = sshll.u32 %s5310_s2, 4  ;;  %s49_s3 = int_to_ptr.hbm [resolvable:$true] %s48_s3 }
   0xb   :  { %s23_s16 = sshll.u32 %s5126_s1, 4  ;;  %s5127_s19 = smov 896   ;;  %s24_s16 = int_to_ptr.vmem [resolvable:$true] %s23_s16 }
   0xc   :  { %s5128_s20 = smov 56   ;;  %s5129_s21 = smov [#allocation7]  }
   0xd   :  { %29 = dma.hbm_to_vmem [thread:$0]  %s22_s15, 1792, %s24_s16, [#allocation3], %s5127_s19, %s5127_s19, %s5128_s20  }
   0xe   :  { %s50_s22 = sshll.u32 %s5129_s21, 4  ;;  %s72_s0 = sshll.u32 %s5312_s4, 4  ;;  %s51_s22 = int_to_ptr.vmem [resolvable:$true] %s50_s22  ;;  %s73_s0 = int_to_ptr.hbm [resolvable:$true] %s72_s0 }
   0xf   :  { %53 = dma.hbm_to_vmem [thread:$0]  %s49_s3, 64, %s51_s22, [#allocation6]  }
  0x10   :  { %s82_s27 = sshll.u32 %s5313_s5, 4  ;;  %s5130_s28 = smov [#allocation10]   ;;  %s83_s27 = int_to_ptr.hbm [resolvable:$true] %s82_s27 }
  0x11   :  { %s74_s29 = sshll.u32 %s5130_s28, 4  ;;  %s5131_s2 = smov [#allocation11]   ;;  %s75_s29 = int_to_ptr.vmem [resolvable:$true] %s74_s29 }
  0x12   :  { %77 = dma.hbm_to_vmem [thread:$0]  %s73_s0, 64, %s75_s29, [#allocation9]  }
  0x13   :  { %s84_s30 = sshll.u32 %s5131_s2, 4  ;;  %s5132_s8 = smov 64   ;;  %s85_s30 = int_to_ptr.vmem [resolvable:$true] %s84_s30 }
  0x14   :  { %s5133_s9 = smov 4  }
  0x15   :  { %90 = dma.hbm_to_vmem [thread:$0]  %s83_s27, 4096, %s85_s30, [#allocation12], %s5132_s8, %s5132_s8, %s5133_s9  }
  0x16   :  { %5112 = dma.done.wait [#allocation3], 1792  }
  0x17   :  { %5113 = vsyncadd [#allocation3], 4294965504 }
  0x18   :  { %5114 = dma.done.wait [#allocation6], 25152  }
  0x19   :  { %5115 = vsyncadd [#allocation6], 4294942144 }
  0x1a   :  { %5116 = dma.done.wait [#allocation9], 16448  }
  0x1b   :  { %5117 = vsyncadd [#allocation9], 4294950848 }
  0x1c   :  { %5118 = dma.done.wait [#allocation12], 4096  }
  0x1d   :  { %5119 = vsyncadd [#allocation12], 4294963200  ;;  %v3247_v0 = vld [vmem:[#allocation5 + $0xe0] sm:$0xf]  ;;  %v4591_v1 = vld [vmem:[#allocation5 + $0xec] sm:$0xf0] }
  0x1e   :  { %v3375_v2 = vld [vmem:[#allocation5 + $0x1e0] sm:$0xf]  ;;  %v3248_v3 = vor.u32 %v4591_v1, %v3247_v0  ;;  %v4623_v4 = vld [vmem:[#allocation5 + $0x1ec] sm:$0xf0]  ;;  %vm1325_vm0 = vcmask 130048   ;;  %s3117_s13 = sshll.u32 %s5315_s7, 4  ;;  %s3118_s13 = int_to_ptr.hbm [resolvable:$true] %s3117_s13 }
  0x1f   :  { %v3503_v5 = vld [vmem:[#allocation5 + $0x2e0] sm:$0xf]  ;;  %v4655_v6 = vld [vmem:[#allocation5 + $0x2ec] sm:$0xf0]  ;;  %v3376_v7 = vor.u32 %v4623_v4, %v3375_v2 }
  0x20   :  { %v3504_v8 = vor.u32 %v4655_v6, %v3503_v5  ;;  %v3631_v9 = vld [vmem:[#allocation5 + $0x3e0] sm:$0xf]  ;;  %v4687_v10 = vld [vmem:[#allocation5 + $0x3ec] sm:$0xf0]  ;;  %1329 = vmatpush.bf16.msra.mxu0 %v3248_v3 }
  0x21   :  { %v3231_v11 = vld [vmem:[#allocation5 + $0xc0] sm:$0xf]  ;;  %v3632_v12 = vor.u32 %v4687_v10, %v3631_v9  ;;  %v4587_v13 = vld [vmem:[#allocation5 + $0xcc] sm:$0xf0]  ;;  %1343 = vmatpush.bf16.msra.mxu1 %v3376_v7 }
  0x22   :  { %v3359_v14 = vld [vmem:[#allocation5 + $0x1c0] sm:$0xf]  ;;  %v4619_v15 = vld [vmem:[#allocation5 + $0x1cc] sm:$0xf0]  ;;  %1357 = vmatpush.bf16.msra.mxu2 %v3504_v8  ;;  %v3232_v16 = vor.u32 %v4587_v13, %v3231_v11 }
  0x23   :  { %v3360_v17 = vor.u32 %v4619_v15, %v3359_v14  ;;  %v3487_v18 = vld [vmem:[#allocation5 + $0x2c0] sm:$0xf]  ;;  %v4651_v19 = vld [vmem:[#allocation5 + $0x2cc] sm:$0xf0]  ;;  %1371 = vmatpush.bf16.msra.mxu3 %v3632_v12 }
  0x24   :  { %v3615_v20 = vld [vmem:[#allocation5 + $0x3c0] sm:$0xf]  ;;  %v3488_v21 = vor.u32 %v4651_v19, %v3487_v18  ;;  %v4683_v22 = vld [vmem:[#allocation5 + $0x3cc] sm:$0xf0]  ;;  %1330 = vmatpush.bf16.msra.mxu0 %v3232_v16 }
  0x25   :  { %v3215_v23 = vld [vmem:[#allocation5 + $0xa0] sm:$0xf]  ;;  %v4583_v24 = vld [vmem:[#allocation5 + $0xac] sm:$0xf0]  ;;  %v3616_v25 = vor.u32 %v4683_v22, %v3615_v20  ;;  %1344 = vmatpush.bf16.msra.mxu1 %v3360_v17 }
  0x26   :  { %v3343_v26 = vld [vmem:[#allocation5 + $0x1a0] sm:$0xf]  ;;  %v4615_v27 = vld [vmem:[#allocation5 + $0x1ac] sm:$0xf0]  ;;  %v3216_v29 = vor.u32 %v4583_v24, %v3215_v23  ;;  %1358 = vmatpush.bf16.msra.mxu2 %v3488_v21 }
  0x27   :  { %v3471_v28 = vld [vmem:[#allocation5 + $0x2a0] sm:$0xf]  ;;  %v4647_v30 = vld [vmem:[#allocation5 + $0x2ac] sm:$0xf0]  ;;  %v3344_v33 = vor.u32 %v4615_v27, %v3343_v26  ;;  %1372 = vmatpush.bf16.msra.mxu3 %v3616_v25 }
  0x28   :  { %v3599_v31 = vld [vmem:[#allocation5 + $0x3a0] sm:$0xf]  ;;  %v4679_v32 = vld [vmem:[#allocation5 + $0x3ac] sm:$0xf0]  ;;  %v3472_v34 = vor.u32 %v4647_v30, %v3471_v28  ;;  %1331 = vmatpush.bf16.msra.mxu0 %v3216_v29 }
  0x29   :  { %v3199_v35 = vld [vmem:[#allocation5 + $0x80] sm:$0xf]  ;;  %v4579_v36 = vld [vmem:[#allocation5 + $0x8c] sm:$0xf0]  ;;  %v3600_v38 = vor.u32 %v4679_v32, %v3599_v31  ;;  %1345 = vmatpush.bf16.msra.mxu1 %v3344_v33  ;;  %v4589_v32 = vld [vmem:[#allocation5 + $0xe4] sm:$0xf] }
  0x2a   :  { %v3327_v37 = vld [vmem:[#allocation5 + $0x180] sm:$0xf]  ;;  %v4611_v39 = vld [vmem:[#allocation5 + $0x18c] sm:$0xf0]  ;;  %v3200_v44 = vor.u32 %v4579_v36, %v3199_v35  ;;  %1359 = vmatpush.bf16.msra.mxu2 %v3472_v34  ;;  %v3249_v33 = vld [vmem:[#allocation5 + $0xf0] sm:$0xf0] }
  0x2b   :  { %v3455_v40 = vld [vmem:[#allocation5 + $0x280] sm:$0xf]  ;;  %v4643_v41 = vld [vmem:[#allocation5 + $0x28c] sm:$0xf0]  ;;  %v3328_v45 = vor.u32 %v4611_v39, %v3327_v37  ;;  %1373 = vmatpush.bf16.msra.mxu3 %v3600_v38  ;;  %v127_v36 = vld [vmem:[#allocation2 + $0x48] sm:$0xff] }
  0x2c   :  { %v3583_v42 = vld [vmem:[#allocation5 + $0x380] sm:$0xf]  ;;  %v4675_v43 = vld [vmem:[#allocation5 + $0x38c] sm:$0xf0]  ;;  %v3456_v46 = vor.u32 %v4643_v41, %v3455_v40  ;;  %1332 = vmatpush.bf16.msra.mxu0 %v3200_v44  ;;  %v4621_v41 = vld [vmem:[#allocation5 + $0x1e4] sm:$0xf] }
  0x2d   :  { %v3183_v47 = vld [vmem:[#allocation5 + $0x60] sm:$0xf]  ;;  %v4575_v48 = vld [vmem:[#allocation5 + $0x6c] sm:$0xf0]  ;;  %v3584_v50 = vor.u32 %v4675_v43, %v3583_v42  ;;  %1346 = vmatpush.bf16.msra.mxu1 %v3328_v45  ;;  %v125_v43 = vld [vmem:[#allocation2 + $0x38] sm:$0xff] }
  0x2e   :  { %v3311_v49 = vld [vmem:[#allocation5 + $0x160] sm:$0xf]  ;;  %v4607_v51 = vld [vmem:[#allocation5 + $0x16c] sm:$0xf0]  ;;  %v3184_v56 = vor.u32 %v4575_v48, %v3183_v47  ;;  %1360 = vmatpush.bf16.msra.mxu2 %v3456_v46  ;;  %v3377_v46 = vld [vmem:[#allocation5 + $0x1f0] sm:$0xf0] }
  0x2f   :  { %v3439_v52 = vld [vmem:[#allocation5 + $0x260] sm:$0xf]  ;;  %v4639_v53 = vld [vmem:[#allocation5 + $0x26c] sm:$0xf0]  ;;  %v3312_v57 = vor.u32 %v4607_v51, %v3311_v49  ;;  %1374 = vmatpush.bf16.msra.mxu3 %v3584_v50  ;;  %v121_v47 = vld [vmem:[#allocation2 + $0x18] sm:$0xff]  ;;  %v3252_v50 = vor.u32 %v4589_v32, %v3249_v33 }
  0x30   :  { %v3567_v54 = vld [vmem:[#allocation5 + $0x360] sm:$0xf]  ;;  %v4671_v55 = vld [vmem:[#allocation5 + $0x36c] sm:$0xf0]  ;;  %v3440_v58 = vor.u32 %v4639_v53, %v3439_v52  ;;  %1333 = vmatpush.bf16.msra.mxu0 %v3184_v56 }
  0x31   :  { %v3167_v59 = vld [vmem:[#allocation5 + $0x40] sm:$0xf]  ;;  %v4571_v60 = vld [vmem:[#allocation5 + $0x4c] sm:$0xf0]  ;;  %v3568_v62 = vor.u32 %v4671_v55, %v3567_v54  ;;  %1347 = vmatpush.bf16.msra.mxu1 %v3312_v57  ;;  %v4585_v57 = vld [vmem:[#allocation5 + $0xc4] sm:$0xf] }
  0x32   :  { %v3295_v61 = vld [vmem:[#allocation5 + $0x140] sm:$0xf]  ;;  %v4603_v63 = vld [vmem:[#allocation5 + $0x14c] sm:$0xf0]  ;;  %v3168_v4 = vor.u32 %v4571_v60, %v3167_v59  ;;  %1361 = vmatpush.bf16.msra.mxu2 %v3440_v58  ;;  %v3233_v58 = vld [vmem:[#allocation5 + $0xd0] sm:$0xf0] }
  0x33   :  { %v3423_v0 = vld [vmem:[#allocation5 + $0x240] sm:$0xf]  ;;  %v4635_v1 = vld [vmem:[#allocation5 + $0x24c] sm:$0xf0]  ;;  %v3296_v6 = vor.u32 %v4603_v63, %v3295_v61  ;;  %1375 = vmatpush.bf16.msra.mxu3 %v3568_v62  ;;  %v119_v61 = vld [vmem:[#allocation2 + $0x8] sm:$0xff]  ;;  %v3380_v63 = vor.u32 %v4621_v41, %v3377_v46 }
  0x34   :  { %v3551_v2 = vld [vmem:[#allocation5 + $0x340] sm:$0xf]  ;;  %v4667_v3 = vld [vmem:[#allocation5 + $0x34c] sm:$0xf0]  ;;  %v3424_v7 = vor.u32 %v4635_v1, %v3423_v0  ;;  %1334 = vmatpush.bf16.msra.mxu0 %v3168_v4  ;;  %v4617_v1 = vld [vmem:[#allocation5 + $0x1c4] sm:$0xf]  ;;  %v3236_v4 = vor.u32 %v4585_v57, %v3233_v58 }
  0x35   :  { %v3151_v5 = vld [vmem:[#allocation5 + $0x20] sm:$0xf]  ;;  %v4567_v8 = vld [vmem:[#allocation5 + $0x2c] sm:$0xf0]  ;;  %v3552_v11 = vor.u32 %v4667_v3, %v3551_v2  ;;  %1348 = vmatpush.bf16.msra.mxu1 %v3296_v6  ;;  %v3361_v2 = vld [vmem:[#allocation5 + $0x1d0] sm:$0xf0] }
  0x36   :  { %v3279_v9 = vld [vmem:[#allocation5 + $0x120] sm:$0xf]  ;;  %v4599_v10 = vld [vmem:[#allocation5 + $0x12c] sm:$0xf0]  ;;  %v3152_v18 = vor.u32 %v4567_v8, %v3151_v5  ;;  %1362 = vmatpush.bf16.msra.mxu2 %v3424_v7  ;;  %v3313_v41 = vld [vmem:[#allocation5 + $0x170] sm:$0xf0] }
  0x37   :  { %v3407_v12 = vld [vmem:[#allocation5 + $0x220] sm:$0xf]  ;;  %v4631_v13 = vld [vmem:[#allocation5 + $0x22c] sm:$0xf0]  ;;  %v3280_v23 = vor.u32 %v4599_v10, %v3279_v9  ;;  %1376 = vmatpush.bf16.msra.mxu3 %v3552_v11  ;;  %v4581_v10 = vld [vmem:[#allocation5 + $0xa4] sm:$0xf] }
  0x38   :  { %v3535_v14 = vld [vmem:[#allocation5 + $0x320] sm:$0xf]  ;;  %v4663_v15 = vld [vmem:[#allocation5 + $0x32c] sm:$0xf0]  ;;  %v3408_v24 = vor.u32 %v4631_v13, %v3407_v12  ;;  %1335 = vmatpush.bf16.msra.mxu0 %v3152_v18  ;;  %v3217_v11 = vld [vmem:[#allocation5 + $0xb0] sm:$0xf0]  ;;  %v3364_v12 = vor.u32 %v4617_v1, %v3361_v2 }
  0x39   :  { %v3135_v16 = vld [vmem:[#allocation5] sm:$0xf]  ;;  %v4563_v17 = vld [vmem:[#allocation5 + $0xc] sm:$0xf0]  ;;  %v3536_v28 = vor.u32 %v4663_v15, %v3535_v14  ;;  %1349 = vmatpush.bf16.msra.mxu1 %v3280_v23  ;;  %v4613_v14 = vld [vmem:[#allocation5 + $0x1a4] sm:$0xf] }
  0x3a   :  { %v3263_v19 = vld [vmem:[#allocation5 + $0x100] sm:$0xf]  ;;  %v4595_v20 = vld [vmem:[#allocation5 + $0x10c] sm:$0xf0]  ;;  %v3136_v35 = vor.u32 %v4563_v17, %v3135_v16  ;;  %1363 = vmatpush.bf16.msra.mxu2 %v3408_v24  ;;  %v3345_v15 = vld [vmem:[#allocation5 + $0x1b0] sm:$0xf0]  ;;  %v3220_v17 = vor.u32 %v4581_v10, %v3217_v11 }
  0x3b   :  { %v3391_v21 = vld [vmem:[#allocation5 + $0x200] sm:$0xf]  ;;  %v4627_v22 = vld [vmem:[#allocation5 + $0x20c] sm:$0xf0]  ;;  %v3264_v39 = vor.u32 %v4595_v20, %v3263_v19  ;;  %1377 = vmatpush.bf16.msra.mxu3 %v3536_v28  ;;  %v3201_v23 = vld [vmem:[#allocation5 + $0x90] sm:$0xf0]  ;;  %v3348_v24 = vor.u32 %v4613_v14, %v3345_v15 }
  0x3c   :  { %v3519_v25 = vld [vmem:[#allocation5 + $0x300] sm:$0xf]  ;;  %v4659_v26 = vld [vmem:[#allocation5 + $0x30c] sm:$0xf0]  ;;  %v3392_v40 = vor.u32 %v4627_v22, %v3391_v21  ;;  %1336 = vmatpush.bf16.msra.mxu0 %v3136_v35  ;;  %v4577_v22 = vld [vmem:[#allocation5 + $0x84] sm:$0xf] }
  0x3d   :  { %v3759_v27 = vld [vmem:[#allocation5 + $0x4e0] sm:$0xf]  ;;  %v4719_v29 = vld [vmem:[#allocation5 + $0x4ec] sm:$0xf0]  ;;  %v3520_v44 = vor.u32 %v4659_v26, %v3519_v25  ;;  %1350 = vmatpush.bf16.msra.mxu1 %v3264_v39  ;;  %v4609_v26 = vld [vmem:[#allocation5 + $0x184] sm:$0xf] }
  0x3e   :  { %v3887_v30 = vld [vmem:[#allocation5 + $0x5e0] sm:$0xf]  ;;  %v4751_v31 = vld [vmem:[#allocation5 + $0x5ec] sm:$0xf0]  ;;  %v3760_v45 = vor.u32 %v4719_v29, %v3759_v27  ;;  %1364 = vmatpush.bf16.msra.mxu2 %v3392_v40  ;;  %v3329_v27 = vld [vmem:[#allocation5 + $0x190] sm:$0xf0]  ;;  %v3204_v29 = vor.u32 %v4577_v22, %v3201_v23 }
  0x3f   :  { %v120_v34 = vld [vmem:[#allocation2 + $0x10] sm:$0xff]  ;;  %v4755_v38 = vld [vmem:[#allocation5 + $0x60c] sm:$0xf0]  ;;  %v3888_v49 = vor.u32 %v4751_v31, %v3887_v30  ;;  %1378 = vmatpush.bf16.msra.mxu3 %v3520_v44  ;;  %v3185_v35 = vld [vmem:[#allocation5 + $0x70] sm:$0xf0] }
  0x40   :  { %v3903_v37 = vld [vmem:[#allocation5 + $0x600] sm:$0xf]  ;;  %v118_v42 = vld [vmem:[#allocation2] sm:$0xff]  ;;  %v5196_v54 = vpack.c.bf16 %v127_v36, %v120_v34  ;;  %1385 = vmatpush.bf16.msrb.mxu0 %v3760_v45  ;;  %v4573_v34 = vld [vmem:[#allocation5 + $0x64] sm:$0xf] }
  0x41   :  { %v128_v48 = vld [vmem:[#allocation2 + $0x50] sm:$0xff]  ;;  %v4715_v52 = vld [vmem:[#allocation5 + $0x4cc] sm:$0xf0]  ;;  %v5198_v55 = vpack.c.bf16 %v125_v43, %v118_v42  ;;  %v3904_v59 = vor.u32 %v4755_v38, %v3903_v37  ;;  %1399 = vmatpush.bf16.msrb.mxu1 %v3888_v49  ;;  %v131_v37 = vld [vmem:[#allocation2 + $0x68] sm:$0xff]  ;;  %v3332_v38 = vor.u32 %v4609_v26, %v3329_v27  ;;  %v3188_v43 = vor.u32 %v4573_v34, %v3185_v35 }
  0x42   :  { %v3743_v51 = vld [vmem:[#allocation5 + $0x4c0] sm:$0xf]  ;;  %v4747_v56 = vld [vmem:[#allocation5 + $0x5cc] sm:$0xf0]  ;;  %v5200_v60 = vpack.c.bf16 %v128_v48, %v121_v47  ;;  %1365 = vmatmul.bf16.vlgmr.msra.gmra.mxu2 %v5196_v54  ;;  %v4605_v40 = vld [vmem:[#allocation5 + $0x164] sm:$0xf] }
  0x43   :  { %v3871_v53 = vld [vmem:[#allocation5 + $0x5c0] sm:$0xf]  ;;  %v126_v62 = vld [vmem:[#allocation2 + $0x40] sm:$0xff]  ;;  %v3744_v0 = vor.u32 %v4715_v52, %v3743_v51  ;;  %1427 = vmatpush.bf16.msrb.mxu3 %v3252_v50  ;;  %1337 = vmatmul.bf16.vlgmr.msra.gmra.mxu0 %v5198_v55  ;;  %v4569_v48 = vld [vmem:[#allocation5 + $0x44] sm:$0xf]  ;;  %v3316_v51 = vor.u32 %v4605_v40, %v3313_v41 }
  0x44   :  { %v3872_v3 = vor.u32 %v4747_v56, %v3871_v53  ;;  %v3727_v5 = vld [vmem:[#allocation5 + $0x4a0] sm:$0xf]  ;;  %v4711_v6 = vld [vmem:[#allocation5 + $0x4ac] sm:$0xf0]  ;;  %v5204_v8 = vpack.c.bf16 %v126_v62, %v119_v61  ;;  %1420 = vmatpush.bf16.msrb.mxu2 %v3904_v59  ;;  %1379 = vmatmul.bf16.vlgmr.msra.gmra.mxu3 %v5200_v60  ;;  %v3169_v49 = vld [vmem:[#allocation5 + $0x50] sm:$0xf0] }
  0x45   :  { %v3855_v7 = vld [vmem:[#allocation5 + $0x5a0] sm:$0xf]  ;;  %v4743_v9 = vld [vmem:[#allocation5 + $0x5ac] sm:$0xf0]  ;;  %1386 = vmatpush.bf16.msrb.mxu0 %v3744_v0  ;;  %v3728_v13 = vor.u32 %v4711_v6, %v3727_v5  ;;  %v4601_v53 = vld [vmem:[#allocation5 + $0x144] sm:$0xf]  ;;  %v3172_v58 = vor.u32 %v4569_v48, %v3169_v49 }
  0x46   :  { %1400 = vmatpush.bf16.msrb.mxu1 %v3872_v3  ;;  %v3856_v16 = vor.u32 %v4743_v9, %v3855_v7  ;;  %v3711_v18 = vld [vmem:[#allocation5 + $0x480] sm:$0xf]  ;;  %v4707_v19 = vld [vmem:[#allocation5 + $0x48c] sm:$0xf0]  ;;  %v3297_v56 = vld [vmem:[#allocation5 + $0x150] sm:$0xf0] }
  0x47   :  { %1428 = vmatpush.bf16.msrb.mxu3 %v3236_v4  ;;  %v3839_v20 = vld [vmem:[#allocation5 + $0x580] sm:$0xf]  ;;  %1351 = vmatmul.bf16.vlgmr.msra.gmra.mxu1 %v5204_v8  ;;  %v4739_v21 = vld [vmem:[#allocation5 + $0x58c] sm:$0xf0]  ;;  %v3712_v25 = vor.u32 %v4707_v19, %v3711_v18  ;;  %v4565_v0 = vld [vmem:[#allocation5 + $0x24] sm:$0xf]  ;;  %v3300_v4 = vor.u32 %v4601_v53, %v3297_v56 }
  0x48   :  { %1441 = vmatpush.bf16.msra.mxu2 %v3380_v63  ;;  %v3840_v28 = vor.u32 %v4739_v21, %v3839_v20  ;;  %v3695_v30 = vld [vmem:[#allocation5 + $0x460] sm:$0xf]  ;;  %v4703_v31 = vld [vmem:[#allocation5 + $0x46c] sm:$0xf0]  ;;  %v3153_v1 = vld [vmem:[#allocation5 + $0x30] sm:$0xf0] }
  0x49   :  { %1387 = vmatpush.bf16.msrb.mxu0 %v3728_v13  ;;  %v3823_v32 = vld [vmem:[#allocation5 + $0x560] sm:$0xf]  ;;  %v4735_v33 = vld [vmem:[#allocation5 + $0x56c] sm:$0xf0]  ;;  %v3696_v39 = vor.u32 %v4703_v31, %v3695_v30  ;;  %v4597_v2 = vld [vmem:[#allocation5 + $0x124] sm:$0xf]  ;;  %v3156_v11 = vor.u32 %v4565_v0, %v3153_v1 }
  0x4a   :  { %1401 = vmatpush.bf16.msrb.mxu1 %v3856_v16  ;;  %v124_v36 = vld [vmem:[#allocation2 + $0x30] sm:$0xff]  ;;  %v3824_v42 = vor.u32 %v4735_v33, %v3823_v32  ;;  %v4699_v45 = vld [vmem:[#allocation5 + $0x44c] sm:$0xf0]  ;;  %v3281_v3 = vld [vmem:[#allocation5 + $0x130] sm:$0xf0] }
  0x4b   :  { %1429 = vmatpush.bf16.msrb.mxu3 %v3220_v17  ;;  %v3679_v44 = vld [vmem:[#allocation5 + $0x440] sm:$0xf]  ;;  %v4731_v47 = vld [vmem:[#allocation5 + $0x54c] sm:$0xf0]  ;;  %v5208_v50 = vpack.c.bf16 %v131_v37, %v124_v36  ;;  %v4561_v13 = vld [vmem:[#allocation5 + $0x4] sm:$0xf]  ;;  %v3284_v21 = vor.u32 %v4597_v2, %v3281_v3 }
  0x4c   :  { %1442 = vmatpush.bf16.msra.mxu2 %v3364_v12  ;;  %v3807_v46 = vld [vmem:[#allocation5 + $0x540] sm:$0xf]  ;;  %v3680_v52 = vor.u32 %v4699_v45, %v3679_v44  ;;  %v4695_v61 = vld [vmem:[#allocation5 + $0x42c] sm:$0xf0]  ;;  %v3137_v14 = vld [vmem:[#allocation5 + $0x10] sm:$0xf0] }
  0x4d   :  { %1388 = vmatpush.bf16.msrb.mxu0 %v3712_v25  ;;  %v3808_v57 = vor.u32 %v4731_v47, %v3807_v46  ;;  %v3663_v59 = vld [vmem:[#allocation5 + $0x420] sm:$0xf]  ;;  %v4727_v63 = vld [vmem:[#allocation5 + $0x52c] sm:$0xf0]  ;;  %v4653_v15 = vld [vmem:[#allocation5 + $0x2e4] sm:$0xf]  ;;  %v3140_v27 = vor.u32 %v4561_v13, %v3137_v14 }
  0x4e   :  { %1402 = vmatpush.bf16.msrb.mxu1 %v3840_v28  ;;  %v3791_v62 = vld [vmem:[#allocation5 + $0x520] sm:$0xf]  ;;  %v3664_v5 = vor.u32 %v4695_v61, %v3663_v59  ;;  %v4691_v7 = vld [vmem:[#allocation5 + $0x40c] sm:$0xf0]  ;;  %v3505_v16 = vld [vmem:[#allocation5 + $0x2f0] sm:$0xf0] }
  0x4f   :  { %1430 = vmatpush.bf16.msrb.mxu3 %v3204_v29  ;;  %v3647_v6 = vld [vmem:[#allocation5 + $0x400] sm:$0xf]  ;;  %v3792_v10 = vor.u32 %v4727_v63, %v3791_v62  ;;  %v4723_v12 = vld [vmem:[#allocation5 + $0x50c] sm:$0xf0]  ;;  %v4685_v17 = vld [vmem:[#allocation5 + $0x3e4] sm:$0xf]  ;;  %v3508_v31 = vor.u32 %v4653_v15, %v3505_v16 }
  0x50   :  { %1443 = vmatpush.bf16.msra.mxu2 %v3348_v24  ;;  %v3775_v9 = vld [vmem:[#allocation5 + $0x500] sm:$0xf]  ;;  %v3633_v18 = vld [vmem:[#allocation5 + $0x3f0] sm:$0xf0]  ;;  %v4717_v19 = vld [vmem:[#allocation5 + $0x4e4] sm:$0xf]  ;;  %v3648_v22 = vor.u32 %v4691_v7, %v3647_v6 }
  0x51   :  { %1389 = vmatpush.bf16.msrb.mxu0 %v3696_v39  ;;  %v3761_v20 = vld [vmem:[#allocation5 + $0x4f0] sm:$0xf0]  ;;  %v129_v24 = vld [vmem:[#allocation2 + $0x58] sm:$0xff]  ;;  %v4593_v25 = vld [vmem:[#allocation5 + $0x104] sm:$0xf]  ;;  %v3776_v26 = vor.u32 %v4723_v12, %v3775_v9  ;;  %v3636_v32 = vor.u32 %v4685_v17, %v3633_v18 }
  0x52   :  { %1403 = vmatpush.bf16.msrb.mxu1 %v3824_v42  ;;  %3917 = vmatmul.msk.bf16.vlgmr.msrb.gmra.mxu2 %vm1325_vm0, %v5208_v50  ;;  %v122_v23 = vld [vmem:[#allocation2 + $0x20] sm:$0xff]  ;;  %v123_v29 = vld [vmem:[#allocation2 + $0x28] sm:$0xff]  ;;  %v4749_v33 = vld [vmem:[#allocation5 + $0x5e4] sm:$0xf]  ;;  %v3764_v36 = vor.u32 %v4717_v19, %v3761_v20 }
  0x53   :  { %1431 = vmatpush.bf16.msrb.mxu3 %v3188_v43  ;;  %v3265_v28 = vld [vmem:[#allocation5 + $0x110] sm:$0xf0]  ;;  %v4649_v35 = vld [vmem:[#allocation5 + $0x2c4] sm:$0xf]  ;;  %v5212_v37 = vpack.c.bf16 %v129_v24, %v122_v23 }
  0x54   :  { %1444 = vmatpush.bf16.msra.mxu2 %v3332_v38  ;;  %v130_v30 = vld [vmem:[#allocation2 + $0x60] sm:$0xff]  ;;  %v4681_v39 = vld [vmem:[#allocation5 + $0x3c4] sm:$0xf]  ;;  %v3268_v41 = vor.u32 %v4593_v25, %v3265_v28 }
  0x55   :  { %1390 = vmatpush.bf16.msrb.mxu0 %v3680_v52  ;;  %v3889_v34 = vld [vmem:[#allocation5 + $0x5f0] sm:$0xf0]  ;;  %v5214_v42 = vpack.c.bf16 %v130_v30, %v123_v29  ;;  %v4713_v43 = vld [vmem:[#allocation5 + $0x4c4] sm:$0xf] }
  0x56   :  { %1404 = vmatpush.bf16.msrb.mxu1 %v3808_v57  ;;  %v3489_v38 = vld [vmem:[#allocation5 + $0x2d0] sm:$0xf0]  ;;  %v3892_v45 = vor.u32 %v4749_v33, %v3889_v34  ;;  %v4745_v48 = vld [vmem:[#allocation5 + $0x5c4] sm:$0xf] }
  0x57   :  { %1432 = vmatpush.bf16.msrb.mxu3 %v3172_v58  ;;  %v3617_v40 = vld [vmem:[#allocation5 + $0x3d0] sm:$0xf0]  ;;  %v3492_v46 = vor.u32 %v4649_v35, %v3489_v38  ;;  %v4677_v56 = vld [vmem:[#allocation5 + $0x3a4] sm:$0xf] }
  0x58   :  { %1445 = vmatpush.bf16.msra.mxu2 %v3316_v51  ;;  %v3745_v44 = vld [vmem:[#allocation5 + $0x4d0] sm:$0xf0]  ;;  %v3620_v47 = vor.u32 %v4681_v39, %v3617_v40  ;;  %v4645_v51 = vld [vmem:[#allocation5 + $0x2a4] sm:$0xf] }
  0x59   :  { %1391 = vmatpush.bf16.msrb.mxu0 %v3664_v5  ;;  %v3873_v49 = vld [vmem:[#allocation5 + $0x5d0] sm:$0xf0]  ;;  %v3748_v52 = vor.u32 %v4713_v43, %v3745_v44  ;;  %v4709_v58 = vld [vmem:[#allocation5 + $0x4a4] sm:$0xf] }
  0x5a   :  { %1405 = vmatpush.bf16.msrb.mxu1 %v3792_v10  ;;  %v3473_v53 = vld [vmem:[#allocation5 + $0x2b0] sm:$0xf0]  ;;  %v3876_v61 = vor.u32 %v4745_v48, %v3873_v49  ;;  %v4741_v0 = vld [vmem:[#allocation5 + $0x5a4] sm:$0xf] }
  0x5b   :  { %1433 = vmatpush.bf16.msrb.mxu3 %v3156_v11  ;;  %v3601_v57 = vld [vmem:[#allocation5 + $0x3b0] sm:$0xf0]  ;;  %v3476_v62 = vor.u32 %v4645_v51, %v3473_v53  ;;  %v4641_v2 = vld [vmem:[#allocation5 + $0x284] sm:$0xf] }
  0x5c   :  { %1446 = vmatpush.bf16.msra.mxu2 %v3300_v4  ;;  %v3729_v59 = vld [vmem:[#allocation5 + $0x4b0] sm:$0xf0]  ;;  %v3604_v63 = vor.u32 %v4677_v56, %v3601_v57  ;;  %v4673_v5 = vld [vmem:[#allocation5 + $0x384] sm:$0xf] }
  0x5d   :  { %1392 = vmatpush.bf16.msrb.mxu0 %v3648_v22  ;;  %v3857_v1 = vld [vmem:[#allocation5 + $0x5b0] sm:$0xf0]  ;;  %v3732_v3 = vor.u32 %v4709_v58, %v3729_v59  ;;  %v4705_v7 = vld [vmem:[#allocation5 + $0x484] sm:$0xf] }
  0x5e   :  { %1406 = vmatpush.bf16.msrb.mxu1 %v3776_v26  ;;  %v3457_v4 = vld [vmem:[#allocation5 + $0x290] sm:$0xf0]  ;;  %v3860_v10 = vor.u32 %v4741_v0, %v3857_v1  ;;  %v4737_v13 = vld [vmem:[#allocation5 + $0x584] sm:$0xf]  ;;  %v3255_v0 = vld [vmem:[#allocation5 + $0xe8] sm:$0xf] }
  0x5f   :  { %1434 = vmatpush.bf16.msrb.mxu3 %v3140_v27  ;;  %v3585_v6 = vld [vmem:[#allocation5 + $0x390] sm:$0xf0]  ;;  %v3460_v11 = vor.u32 %v4641_v2, %v3457_v4  ;;  %v4637_v15 = vld [vmem:[#allocation5 + $0x264] sm:$0xf]  ;;  %v4592_v1 = vld [vmem:[#allocation5 + $0xf4] sm:$0xf0] }
  0x60   :  { %1447 = vmatpush.bf16.msra.mxu2 %v3284_v21  ;;  %1393 = vmatmul.bf16.vlgmr.msrb.gmra.mxu0 %v5212_v37  ;;  %v3713_v9 = vld [vmem:[#allocation5 + $0x490] sm:$0xf0]  ;;  %v3588_v12 = vor.u32 %v4673_v5, %v3585_v6  ;;  %v4669_v18 = vld [vmem:[#allocation5 + $0x364] sm:$0xf]  ;;  %v3511_v5 = vld [vmem:[#allocation5 + $0x2e8] sm:$0xf] }
  0x61   :  { %1455 = vmatpush.bf16.msra.mxu0 %v3508_v31  ;;  %1407 = vmatmul.bf16.vlgmr.msrb.gmra.mxu1 %v5214_v42  ;;  %v3841_v14 = vld [vmem:[#allocation5 + $0x590] sm:$0xf0]  ;;  %v3716_v16 = vor.u32 %v4705_v7, %v3713_v9  ;;  %v4701_v20 = vld [vmem:[#allocation5 + $0x464] sm:$0xf]  ;;  %v4656_v6 = vld [vmem:[#allocation5 + $0x2f4] sm:$0xf0] }
  0x62   :  { %1469 = vmatpush.bf16.msra.mxu1 %v3636_v32  ;;  %1435 = vmatmul.bf16.vlgmr.msrb.gmra.mxu3 %v5198_v55  ;;  %v3441_v17 = vld [vmem:[#allocation5 + $0x270] sm:$0xf0]  ;;  %v3844_v22 = vor.u32 %v4737_v13, %v3841_v14  ;;  %v4733_v25 = vld [vmem:[#allocation5 + $0x564] sm:$0xf]  ;;  %v3256_v13 = vor.u32 %v4592_v1, %v3255_v0  ;;  %v3639_v14 = vld [vmem:[#allocation5 + $0x3e8] sm:$0xf] }
  0x63   :  { %1483 = vmatpush.bf16.msra.mxu3 %v3764_v36  ;;  %v3569_v19 = vld [vmem:[#allocation5 + $0x370] sm:$0xf0]  ;;  %v3444_v23 = vor.u32 %v4637_v15, %v3441_v17  ;;  %v4633_v27 = vld [vmem:[#allocation5 + $0x244] sm:$0xf]  ;;  %v4688_v15 = vld [vmem:[#allocation5 + $0x3f4] sm:$0xf0] }
  0x64   :  { %1448 = vmatpush.bf16.msra.mxu2 %v3268_v41  ;;  %v3697_v21 = vld [vmem:[#allocation5 + $0x470] sm:$0xf0]  ;;  %v3572_v24 = vor.u32 %v4669_v18, %v3569_v19  ;;  %v4665_v30 = vld [vmem:[#allocation5 + $0x344] sm:$0xf]  ;;  %v3383_v17 = vld [vmem:[#allocation5 + $0x1e8] sm:$0xf]  ;;  %v3512_v19 = vor.u32 %v4656_v6, %v3511_v5 }
  0x65   :  { %1456 = vmatpush.bf16.msra.mxu0 %v3492_v46  ;;  %v3825_v26 = vld [vmem:[#allocation5 + $0x570] sm:$0xf0]  ;;  %v3700_v28 = vor.u32 %v4701_v20, %v3697_v21  ;;  %v4697_v32 = vld [vmem:[#allocation5 + $0x444] sm:$0xf]  ;;  %v4624_v18 = vld [vmem:[#allocation5 + $0x1f4] sm:$0xf0] }
  0x66   :  { %1470 = vmatpush.bf16.msra.mxu1 %v3620_v47  ;;  %v3425_v29 = vld [vmem:[#allocation5 + $0x250] sm:$0xf0]  ;;  %v3828_v34 = vor.u32 %v4733_v25, %v3825_v26  ;;  %v4729_v38 = vld [vmem:[#allocation5 + $0x544] sm:$0xf]  ;;  %v3239_v21 = vld [vmem:[#allocation5 + $0xc8] sm:$0xf]  ;;  %v3384_v26 = vor.u32 %v4624_v18, %v3383_v17 }
  0x67   :  { %1484 = vmatpush.bf16.msra.mxu3 %v3748_v52  ;;  %1449 = vmatmul.bf16.vlgmr.msra.gmra.mxu2 %v5204_v8  ;;  %v3553_v31 = vld [vmem:[#allocation5 + $0x350] sm:$0xf0]  ;;  %v3428_v35 = vor.u32 %v4633_v27, %v3425_v29  ;;  %v4629_v40 = vld [vmem:[#allocation5 + $0x224] sm:$0xf]  ;;  %v4652_v25 = vld [vmem:[#allocation5 + $0x2d4] sm:$0xf0] }
  0x68   :  { %1497 = vmatpush.bf16.msrb.mxu2 %v3892_v45  ;;  %v3681_v33 = vld [vmem:[#allocation5 + $0x450] sm:$0xf0]  ;;  %v3556_v36 = vor.u32 %v4665_v30, %v3553_v31  ;;  %v4661_v44 = vld [vmem:[#allocation5 + $0x324] sm:$0xf]  ;;  %v3623_v27 = vld [vmem:[#allocation5 + $0x3c8] sm:$0xf] }
  0x69   :  { %1457 = vmatpush.bf16.msra.mxu0 %v3476_v62  ;;  %v3809_v39 = vld [vmem:[#allocation5 + $0x550] sm:$0xf0]  ;;  %v3684_v41 = vor.u32 %v4697_v32, %v3681_v33  ;;  %v4693_v46 = vld [vmem:[#allocation5 + $0x424] sm:$0xf]  ;;  %v3367_v30 = vld [vmem:[#allocation5 + $0x1c8] sm:$0xf] }
  0x6a   :  { %1471 = vmatpush.bf16.msra.mxu1 %v3604_v63  ;;  %v3409_v43 = vld [vmem:[#allocation5 + $0x230] sm:$0xf0]  ;;  %v3812_v48 = vor.u32 %v4729_v38, %v3809_v39  ;;  %v4725_v49 = vld [vmem:[#allocation5 + $0x524] sm:$0xf]  ;;  %v4620_v31 = vld [vmem:[#allocation5 + $0x1d4] sm:$0xf0] }
  0x6b   :  { %1485 = vmatpush.bf16.msra.mxu3 %v3732_v3  ;;  %v3537_v45 = vld [vmem:[#allocation5 + $0x330] sm:$0xf0]  ;;  %v3412_v52 = vor.u32 %v4629_v40, %v3409_v43  ;;  %v4625_v56 = vld [vmem:[#allocation5 + $0x204] sm:$0xf]  ;;  %v3223_v33 = vld [vmem:[#allocation5 + $0xa8] sm:$0xf]  ;;  %v3368_v39 = vor.u32 %v4620_v31, %v3367_v30 }
  0x6c   :  { %1498 = vmatpush.bf16.msrb.mxu2 %v3876_v61  ;;  %v3665_v47 = vld [vmem:[#allocation5 + $0x430] sm:$0xf0]  ;;  %v3540_v53 = vor.u32 %v4661_v44, %v3537_v45  ;;  %v4657_v58 = vld [vmem:[#allocation5 + $0x304] sm:$0xf]  ;;  %v4648_v38 = vld [vmem:[#allocation5 + $0x2b4] sm:$0xf0] }
  0x6d   :  { %1458 = vmatpush.bf16.msra.mxu0 %v3460_v11  ;;  %v3793_v51 = vld [vmem:[#allocation5 + $0x530] sm:$0xf0]  ;;  %v3668_v59 = vor.u32 %v4693_v46, %v3665_v47  ;;  %v4689_v62 = vld [vmem:[#allocation5 + $0x404] sm:$0xf]  ;;  %v3607_v40 = vld [vmem:[#allocation5 + $0x3a8] sm:$0xf] }
  0x6e   :  { %1472 = vmatpush.bf16.msra.mxu1 %v3588_v12  ;;  %v3393_v57 = vld [vmem:[#allocation5 + $0x210] sm:$0xf0]  ;;  %v4753_v2 = vld [vmem:[#allocation5 + $0x604] sm:$0xf]  ;;  %v3796_v3 = vor.u32 %v4725_v49, %v3793_v51  ;;  %v3351_v44 = vld [vmem:[#allocation5 + $0x1a8] sm:$0xf] }
  0x6f   :  { %1486 = vmatpush.bf16.msra.mxu3 %v3716_v16  ;;  %v3521_v61 = vld [vmem:[#allocation5 + $0x310] sm:$0xf0]  ;;  %v3396_v7 = vor.u32 %v4625_v56, %v3393_v57  ;;  %v4616_v45 = vld [vmem:[#allocation5 + $0x1b4] sm:$0xf0]  ;;  %v3207_v47 = vld [vmem:[#allocation5 + $0x88] sm:$0xf] }
  0x70   :  { %1499 = vmatpush.bf16.msrb.mxu2 %v3860_v10  ;;  %v3649_v63 = vld [vmem:[#allocation5 + $0x410] sm:$0xf0]  ;;  %v3524_v9 = vor.u32 %v4657_v58, %v3521_v61  ;;  %v4721_v10 = vld [vmem:[#allocation5 + $0x504] sm:$0xf]  ;;  %v3463_v51 = vld [vmem:[#allocation5 + $0x288] sm:$0xf] }
  0x71   :  { %1459 = vmatpush.bf16.msra.mxu0 %v3444_v23  ;;  %v3905_v4 = vld [vmem:[#allocation5 + $0x610] sm:$0xf0]  ;;  %v3652_v12 = vor.u32 %v4689_v62, %v3649_v63  ;;  %v3640_v23 = vor.u32 %v4688_v15, %v3639_v14  ;;  %v3591_v56 = vld [vmem:[#allocation5 + $0x388] sm:$0xf]  ;;  %v4676_v57 = vld [vmem:[#allocation5 + $0x394] sm:$0xf0] }
  0x72   :  { %1473 = vmatpush.bf16.msra.mxu1 %v3572_v24  ;;  %v3777_v11 = vld [vmem:[#allocation5 + $0x510] sm:$0xf0]  ;;  %v3908_v16 = vor.u32 %v4753_v2, %v3905_v4  ;;  %v3495_v24 = vld [vmem:[#allocation5 + $0x2c8] sm:$0xf]  ;;  %v4612_v61 = vld [vmem:[#allocation5 + $0x194] sm:$0xf0]  ;;  %v3592_v1 = vor.u32 %v4676_v57, %v3591_v56 }
  0x73   :  { %1487 = vmatpush.bf16.msra.mxu3 %v3700_v28  ;;  %v3780_v20 = vor.u32 %v4721_v10, %v3777_v11  ;;  %v4684_v28 = vld [vmem:[#allocation5 + $0x3d4] sm:$0xf0]  ;;  %v3496_v32 = vor.u32 %v4652_v25, %v3495_v24  ;;  %v3191_v63 = vld [vmem:[#allocation5 + $0x68] sm:$0xf]  ;;  %v4590_v56 = vld [vmem:[#allocation5 + $0xec] sm:$0xf] }
  0x74   :  { %1500 = vmatpush.bf16.msrb.mxu2 %v3844_v22  ;;  %v4588_v22 = vld [vmem:[#allocation5 + $0xd4] sm:$0xf0]  ;;  %v3447_v2 = vld [vmem:[#allocation5 + $0x268] sm:$0xf]  ;;  %v3257_v57 = vld [vmem:[#allocation5 + $0xf8] sm:$0xf0] }
  0x75   :  { %1460 = vmatpush.bf16.msra.mxu0 %v3428_v35  ;;  %v3240_v29 = vor.u32 %v4588_v22, %v3239_v21  ;;  %v3624_v35 = vor.u32 %v4684_v28, %v3623_v27  ;;  %v4576_v0 = vld [vmem:[#allocation5 + $0x74] sm:$0xf0]  ;;  %v3575_v5 = vld [vmem:[#allocation5 + $0x368] sm:$0xf] }
  0x76   :  { %1474 = vmatpush.bf16.msra.mxu1 %v3556_v36  ;;  %v3479_v36 = vld [vmem:[#allocation5 + $0x2a8] sm:$0xf]  ;;  %v4672_v6 = vld [vmem:[#allocation5 + $0x374] sm:$0xf0] }
  0x77   :  { %1488 = vmatpush.bf16.msra.mxu3 %v3684_v41  ;;  %v4680_v41 = vld [vmem:[#allocation5 + $0x3b4] sm:$0xf0]  ;;  %v3480_v46 = vor.u32 %v4648_v38, %v3479_v36  ;;  %v3576_v14 = vor.u32 %v4672_v6, %v3575_v5  ;;  %v3431_v15 = vld [vmem:[#allocation5 + $0x248] sm:$0xf]  ;;  %v3260_v6 = vor.u32 %v4590_v56, %v3257_v57 }
  0x78   :  { %1501 = vmatpush.bf16.msrb.mxu2 %v3828_v34  ;;  %v4584_v34 = vld [vmem:[#allocation5 + $0xb4] sm:$0xf0]  ;;  %v3608_v49 = vor.u32 %v4680_v41, %v3607_v40  ;;  %v3559_v18 = vld [vmem:[#allocation5 + $0x348] sm:$0xf] }
  0x79   :  { %1461 = vmatpush.bf16.msra.mxu0 %v3412_v52  ;;  %v3224_v43 = vor.u32 %v4584_v34, %v3223_v33  ;;  %v4644_v52 = vld [vmem:[#allocation5 + $0x294] sm:$0xf0]  ;;  %v3303_v21 = vld [vmem:[#allocation5 + $0x148] sm:$0xf] }
  0x7a   :  { %1475 = vmatpush.bf16.msra.mxu1 %v3540_v53  ;;  %v3352_v53 = vor.u32 %v4616_v45, %v3351_v44  ;;  %v3464_v62 = vor.u32 %v4644_v52, %v3463_v51  ;;  %v4608_v10 = vld [vmem:[#allocation5 + $0x174] sm:$0xf0]  ;;  %v3159_v24 = vld [vmem:[#allocation5 + $0x28] sm:$0xf] }
  0x7b   :  { %1489 = vmatpush.bf16.msra.mxu3 %v3668_v59  ;;  %v3335_v59 = vld [vmem:[#allocation5 + $0x188] sm:$0xf]  ;;  %v4604_v22 = vld [vmem:[#allocation5 + $0x154] sm:$0xf0] }
  0x7c   :  { %1502 = vmatpush.bf16.msrb.mxu2 %v3812_v48  ;;  %v4580_v48 = vld [vmem:[#allocation5 + $0x94] sm:$0xf0]  ;;  %v3336_v4 = vor.u32 %v4612_v61, %v3335_v59  ;;  %v3415_v27 = vld [vmem:[#allocation5 + $0x228] sm:$0xf] }
  0x7d   :  { %1462 = vmatpush.bf16.msra.mxu0 %v3396_v7  ;;  %v3208_v58 = vor.u32 %v4580_v48, %v3207_v47  ;;  %v3192_v7 = vor.u32 %v4576_v0, %v3191_v63  ;;  %v4568_v25 = vld [vmem:[#allocation5 + $0x34] sm:$0xf0]  ;;  %v3543_v30 = vld [vmem:[#allocation5 + $0x328] sm:$0xf] }
  0x7e   :  { %1476 = vmatpush.bf16.msra.mxu1 %v3524_v9  ;;  %v3319_v9 = vld [vmem:[#allocation5 + $0x168] sm:$0xf]  ;;  %v4632_v28 = vld [vmem:[#allocation5 + $0x234] sm:$0xf0] }
  0x7f   :  { %1490 = vmatpush.bf16.msra.mxu3 %v3652_v12  ;;  %v3175_v12 = vld [vmem:[#allocation5 + $0x48] sm:$0xf]  ;;  %v3320_v17 = vor.u32 %v4608_v10, %v3319_v9  ;;  %v4664_v31 = vld [vmem:[#allocation5 + $0x334] sm:$0xf0]  ;;  %v3416_v36 = vor.u32 %v4632_v28, %v3415_v27  ;;  %v4586_v9 = vld [vmem:[#allocation5 + $0xcc] sm:$0xf] }
  0x80   :  { %1503 = vmatpush.bf16.msrb.mxu2 %v3796_v3  ;;  %1463 = vmatmul.bf16.vlgmr.msra.gmra.mxu0 %v5196_v54  ;;  %v4640_v3 = vld [vmem:[#allocation5 + $0x274] sm:$0xf0]  ;;  %v3287_v33 = vld [vmem:[#allocation5 + $0x128] sm:$0xf]  ;;  %v3544_v41 = vor.u32 %v4664_v31, %v3543_v30  ;;  %v3241_v10 = vld [vmem:[#allocation5 + $0xd8] sm:$0xf0] }
  0x81   :  { %1553 = vmatpush.bf16.msrb.mxu0 %v3512_v19  ;;  %1477 = vmatmul.bf16.vlgmr.msra.gmra.mxu1 %v5200_v60  ;;  %v3448_v11 = vor.u32 %v4640_v3, %v3447_v2  ;;  %v4668_v19 = vld [vmem:[#allocation5 + $0x354] sm:$0xf0]  ;;  %v3399_v44 = vld [vmem:[#allocation5 + $0x208] sm:$0xf]  ;;  %v4622_v3 = vld [vmem:[#allocation5 + $0x1ec] sm:$0xf] }
  0x82   :  { %1525 = vmatpush.bf16.msrb.mxu1 %v3256_v13  ;;  %1491 = vmatmul.bf16.vlgmr.msra.gmra.mxu3 %v5212_v37  ;;  %v4572_v13 = vld [vmem:[#allocation5 + $0x54] sm:$0xf0]  ;;  %v3895_v61 = vld [vmem:[#allocation5 + $0x5e8] sm:$0xf]  ;;  %v3353_v30 = vld [vmem:[#allocation5 + $0x1b8] sm:$0xf0] }
  0x83   :  { %1518 = vmatpush.bf16.msrb.mxu3 %v3908_v16  ;;  %v4636_v16 = vld [vmem:[#allocation5 + $0x254] sm:$0xf0]  ;;  %v3751_v63 = vld [vmem:[#allocation5 + $0x4c8] sm:$0xf] }
  0x84   :  { %1504 = vmatpush.bf16.msrb.mxu2 %v3780_v20  ;;  %v3176_v20 = vor.u32 %v4572_v13, %v3175_v12  ;;  %v4600_v34 = vld [vmem:[#allocation5 + $0x134] sm:$0xf0]  ;;  %v3879_v13 = vld [vmem:[#allocation5 + $0x5c8] sm:$0xf] }
  0x85   :  { %1554 = vmatpush.bf16.msrb.mxu0 %v3496_v32  ;;  %v3160_v32 = vor.u32 %v4568_v25, %v3159_v24  ;;  %v4564_v38 = vld [vmem:[#allocation5 + $0x14] sm:$0xf0]  ;;  %v3288_v47 = vor.u32 %v4600_v34, %v3287_v33  ;;  %v3863_v25 = vld [vmem:[#allocation5 + $0x5a8] sm:$0xf]  ;;  %v4578_v33 = vld [vmem:[#allocation5 + $0x8c] sm:$0xf] }
  0x86   :  { %1526 = vmatpush.bf16.msrb.mxu1 %v3240_v29  ;;  %v3304_v29 = vor.u32 %v4604_v22, %v3303_v21  ;;  %v4720_v40 = vld [vmem:[#allocation5 + $0x4f4] sm:$0xf0]  ;;  %v4582_v21 = vld [vmem:[#allocation5 + $0xac] sm:$0xf]  ;;  %v3225_v22 = vld [vmem:[#allocation5 + $0xb8] sm:$0xf0] }
  0x87   :  { %1539 = vmatpush.bf16.msra.mxu3 %v3384_v26  ;;  %1505 = vmatmul.bf16.vlgmr.msrb.gmra.mxu2 %v5214_v42  ;;  %v3560_v26 = vor.u32 %v4668_v19, %v3559_v18  ;;  %v4628_v45 = vld [vmem:[#allocation5 + $0x214] sm:$0xf0]  ;;  %v3369_v18 = vld [vmem:[#allocation5 + $0x1d8] sm:$0xf0]  ;;  %v3244_v19 = vor.u32 %v4586_v9, %v3241_v10  ;;  %v3719_v27 = vld [vmem:[#allocation5 + $0x488] sm:$0xf]  ;;  %v3228_v31 = vor.u32 %v4582_v21, %v3225_v22 }
  0x88   :  { %1567 = vmatpush.bf16.msra.mxu2 %v3640_v23  ;;  %v3432_v23 = vor.u32 %v4636_v16, %v3431_v15  ;;  %v4660_v48 = vld [vmem:[#allocation5 + $0x314] sm:$0xf0]  ;;  %v3400_v59 = vor.u32 %v4628_v45, %v3399_v44  ;;  %v3735_v15 = vld [vmem:[#allocation5 + $0x4a8] sm:$0xf]  ;;  %v3209_v34 = vld [vmem:[#allocation5 + $0x98] sm:$0xf0] }
  0x89   :  { %1555 = vmatpush.bf16.msrb.mxu0 %v3480_v46  ;;  %v3527_v46 = vld [vmem:[#allocation5 + $0x308] sm:$0xf]  ;;  %v4756_v51 = vld [vmem:[#allocation5 + $0x614] sm:$0xf0]  ;;  %v3337_v44 = vld [vmem:[#allocation5 + $0x198] sm:$0xf0]  ;;  %v3212_v45 = vor.u32 %v4578_v33, %v3209_v34 }
  0x8a   :  { %1527 = vmatpush.bf16.msrb.mxu1 %v3224_v43  ;;  %v3271_v43 = vld [vmem:[#allocation5 + $0x108] sm:$0xf]  ;;  %v3528_v0 = vor.u32 %v4660_v48, %v3527_v46  ;;  %v4712_v16 = vld [vmem:[#allocation5 + $0x4b4] sm:$0xf0]  ;;  %v3193_v48 = vld [vmem:[#allocation5 + $0x78] sm:$0xf0] }
  0x8b   :  { %1540 = vmatpush.bf16.msra.mxu3 %v3368_v39  ;;  %v3767_v39 = vld [vmem:[#allocation5 + $0x4e8] sm:$0xf]  ;;  %v4708_v28 = vld [vmem:[#allocation5 + $0x494] sm:$0xf0]  ;;  %v3305_v9 = vld [vmem:[#allocation5 + $0x158] sm:$0xf0] }
  0x8c   :  { %1568 = vmatpush.bf16.msra.mxu2 %v3624_v35  ;;  %v3143_v35 = vld [vmem:[#allocation5 + $0x8] sm:$0xf]  ;;  %v4700_v57 = vld [vmem:[#allocation5 + $0x454] sm:$0xf0]  ;;  %v3289_v21 = vld [vmem:[#allocation5 + $0x138] sm:$0xf0] }
  0x8d   :  { %1556 = vmatpush.bf16.msrb.mxu0 %v3464_v62  ;;  %v3144_v52 = vor.u32 %v4564_v38, %v3143_v35  ;;  %v4752_v62 = vld [vmem:[#allocation5 + $0x5f4] sm:$0xf0]  ;;  %v3720_v35 = vor.u32 %v4708_v28, %v3719_v27  ;;  %v3847_v38 = vld [vmem:[#allocation5 + $0x588] sm:$0xf]  ;;  %v4562_v27 = vld [vmem:[#allocation5 + $0xc] sm:$0xf] }
  0x8e   :  { %1528 = vmatpush.bf16.msrb.mxu1 %v3208_v58  ;;  %v3768_v58 = vor.u32 %v4720_v40, %v3767_v39  ;;  %v4740_v39 = vld [vmem:[#allocation5 + $0x594] sm:$0xf0]  ;;  %v3703_v40 = vld [vmem:[#allocation5 + $0x468] sm:$0xf]  ;;  %v3145_v28 = vld [vmem:[#allocation5 + $0x18] sm:$0xf0] }
  0x8f   :  { %1541 = vmatpush.bf16.msra.mxu3 %v3352_v53  ;;  %v4596_v53 = vld [vmem:[#allocation5 + $0x114] sm:$0xf0]  ;;  %v3848_v46 = vor.u32 %v4740_v39, %v3847_v38  ;;  %v3687_v56 = vld [vmem:[#allocation5 + $0x448] sm:$0xf]  ;;  %v3641_v33 = vld [vmem:[#allocation5 + $0x3f8] sm:$0xf0]  ;;  %v3148_v39 = vor.u32 %v4562_v27, %v3145_v28 }
  0x90   :  { %1569 = vmatpush.bf16.msra.mxu2 %v3608_v49  ;;  %v3911_v49 = vld [vmem:[#allocation5 + $0x608] sm:$0xf]  ;;  %v3272_v5 = vor.u32 %v4596_v53, %v3271_v43  ;;  %v4610_v43 = vld [vmem:[#allocation5 + $0x18c] sm:$0xf]  ;;  %v4736_v53 = vld [vmem:[#allocation5 + $0x574] sm:$0xf0] }
  0x91   :  { %1557 = vmatpush.bf16.msrb.mxu0 %v3448_v11  ;;  %v3912_v2 = vor.u32 %v4756_v51, %v3911_v49  ;;  %v3340_v51 = vor.u32 %v4610_v43, %v3337_v44  ;;  %v4650_v38 = vld [vmem:[#allocation5 + $0x2cc] sm:$0xf]  ;;  %v3273_v43 = vld [vmem:[#allocation5 + $0x118] sm:$0xf0] }
  0x92   :  { %1529 = vmatpush.bf16.msrb.mxu1 %v3192_v7  ;;  %3918 = vmatmul.msk.bf16.vlgmr.msrb.gmra.mxu3 %vm1325_vm0, %v5208_v50  ;;  %v3896_v7 = vor.u32 %v4752_v62, %v3895_v61  ;;  %v3577_v28 = vld [vmem:[#allocation5 + $0x378] sm:$0xf0] }
  0x93   :  { %1542 = vmatpush.bf16.msra.mxu3 %v3336_v4  ;;  %v3385_v4 = vld [vmem:[#allocation5 + $0x1f8] sm:$0xf0] }
  0x94   :  { %1570 = vmatpush.bf16.msra.mxu2 %v3592_v1  ;;  %v4716_v1 = vld [vmem:[#allocation5 + $0x4d4] sm:$0xf0]  ;;  %v3388_v12 = vor.u32 %v4622_v3, %v3385_v4  ;;  %v3815_v3 = vld [vmem:[#allocation5 + $0x548] sm:$0xf] }
  0x95   :  { %1558 = vmatpush.bf16.msrb.mxu0 %v3432_v23  ;;  %v3752_v11 = vor.u32 %v4716_v1, %v3751_v63  ;;  %v3736_v23 = vor.u32 %v4712_v16, %v3735_v15  ;;  %v4570_v63 = vld [vmem:[#allocation5 + $0x4c] sm:$0xf]  ;;  %v3688_v1 = vor.u32 %v4700_v57, %v3687_v56  ;;  %v4732_v4 = vld [vmem:[#allocation5 + $0x554] sm:$0xf0]  ;;  %v3799_v16 = vld [vmem:[#allocation5 + $0x528] sm:$0xf] }
  0x96   :  { %1530 = vmatpush.bf16.msrb.mxu1 %v3176_v20  ;;  %v4714_v56 = vld [vmem:[#allocation5 + $0x4cc] sm:$0xf]  ;;  %v3753_v57 = vld [vmem:[#allocation5 + $0x4d8] sm:$0xf0] }
  0x97   :  { %1543 = vmatpush.bf16.msra.mxu3 %v3320_v17  ;;  %v4618_v17 = vld [vmem:[#allocation5 + $0x1cc] sm:$0xf] }
  0x98   :  { %1571 = vmatpush.bf16.msra.mxu2 %v3576_v14  ;;  %v4748_v14 = vld [vmem:[#allocation5 + $0x5d4] sm:$0xf0]  ;;  %v3372_v24 = vor.u32 %v4618_v17, %v3369_v18  ;;  %v3655_v18 = vld [vmem:[#allocation5 + $0x408] sm:$0xf] }
  0x99   :  { %1559 = vmatpush.bf16.msrb.mxu0 %v3416_v36  ;;  %v3880_v20 = vor.u32 %v4748_v14, %v3879_v13  ;;  %v3161_v13 = vld [vmem:[#allocation5 + $0x38] sm:$0xf0]  ;;  %v4728_v17 = vld [vmem:[#allocation5 + $0x534] sm:$0xf0] }
  0x9a   :  { %1531 = vmatpush.bf16.msrb.mxu1 %v3160_v32 }
  0x9b   :  { %1544 = vmatpush.bf16.msra.mxu3 %v3304_v29  ;;  %v4614_v29 = vld [vmem:[#allocation5 + $0x1ac] sm:$0xf] }
  0x9c   :  { %1572 = vmatpush.bf16.msra.mxu2 %v3560_v26  ;;  %v4744_v26 = vld [vmem:[#allocation5 + $0x5b4] sm:$0xf0]  ;;  %v3356_v36 = vor.u32 %v4614_v29, %v3353_v30 }
  0x9d   :  { %1560 = vmatpush.bf16.msrb.mxu0 %v3400_v59  ;;  %v3864_v32 = vor.u32 %v4744_v26, %v3863_v25  ;;  %v3321_v59 = vld [vmem:[#allocation5 + $0x178] sm:$0xf0]  ;;  %v3800_v25 = vor.u32 %v4728_v17, %v3799_v16  ;;  %v3783_v26 = vld [vmem:[#allocation5 + $0x508] sm:$0xf] }
  0x9e   :  { %1532 = vmatpush.bf16.msrb.mxu1 %v3144_v52  ;;  %v3831_v52 = vld [vmem:[#allocation5 + $0x568] sm:$0xf]  ;;  %v3593_v17 = vld [vmem:[#allocation5 + $0x398] sm:$0xf0] }
  0x9f   :  { %1545 = vmatpush.bf16.msra.mxu3 %v3288_v47  ;;  %v4574_v47 = vld [vmem:[#allocation5 + $0x6c] sm:$0xf]  ;;  %v3832_v62 = vor.u32 %v4736_v53, %v3831_v52  ;;  %v3625_v53 = vld [vmem:[#allocation5 + $0x3d8] sm:$0xf0] }
  0xa0   :  { %1573 = vmatpush.bf16.msra.mxu2 %v3544_v41  ;;  %1561 = vmatmul.bf16.vlgmr.msrb.gmra.mxu0 %v5196_v54  ;;  %v4704_v41 = vld [vmem:[#allocation5 + $0x474] sm:$0xf0]  ;;  %v3196_v61 = vor.u32 %v4574_v47, %v3193_v48 }
  0xa1   :  { %1616 = vmatpush.bf16.msra.mxu0 %v3912_v2  ;;  %1533 = vmatmul.bf16.vlgmr.msrb.gmra.mxu1 %v5198_v55  ;;  %v3704_v49 = vor.u32 %v4704_v41, %v3703_v40  ;;  %v3497_v40 = vld [vmem:[#allocation5 + $0x2d8] sm:$0xf0]  ;;  %v4594_v41 = vld [vmem:[#allocation5 + $0x10c] sm:$0xf] }
  0xa2   :  { %1581 = vmatpush.bf16.msra.mxu1 %v3768_v58  ;;  %v4606_v58 = vld [vmem:[#allocation5 + $0x16c] sm:$0xf]  ;;  %v3276_v52 = vor.u32 %v4594_v41, %v3273_v43  ;;  %v3689_v43 = vld [vmem:[#allocation5 + $0x458] sm:$0xf0] }
  0xa3   :  { %1546 = vmatpush.bf16.msra.mxu3 %v3272_v5  ;;  %v3324_v2 = vor.u32 %v4606_v58, %v3321_v59  ;;  %v3671_v5 = vld [vmem:[#allocation5 + $0x428] sm:$0xf]  ;;  %v4646_v59 = vld [vmem:[#allocation5 + $0x2ac] sm:$0xf] }
  0xa4   :  { %1574 = vmatpush.bf16.msra.mxu2 %v3528_v0  ;;  %v3177_v0 = vld [vmem:[#allocation5 + $0x58] sm:$0xf0]  ;;  %v4698_v41 = vld [vmem:[#allocation5 + $0x44c] sm:$0xf] }
  0xa5   :  { %1637 = vmatpush.bf16.msrb.mxu0 %v3388_v12  ;;  %v3180_v10 = vor.u32 %v4570_v63, %v3177_v0  ;;  %v4566_v12 = vld [vmem:[#allocation5 + $0x2c] sm:$0xf]  ;;  %v3881_v63 = vld [vmem:[#allocation5 + $0x5d8] sm:$0xf0] }
  0xa6   :  { %1582 = vmatpush.bf16.msra.mxu1 %v3752_v11  ;;  %1547 = vmatmul.bf16.vlgmr.msra.gmra.mxu3 %v5204_v8  ;;  %v3816_v11 = vor.u32 %v4732_v4, %v3815_v3  ;;  %v3164_v22 = vor.u32 %v4566_v12, %v3161_v13  ;;  %v3609_v4 = vld [vmem:[#allocation5 + $0x3b8] sm:$0xf0] }
  0xa7   :  { %1595 = vmatpush.bf16.msrb.mxu3 %v3896_v7  ;;  %1575 = vmatmul.bf16.vlgmr.msra.gmra.mxu2 %v5200_v60  ;;  %v4602_v7 = vld [vmem:[#allocation5 + $0x14c] sm:$0xf]  ;;  %v3865_v12 = vld [vmem:[#allocation5 + $0x5b8] sm:$0xf0] }
  0xa8   :  { %1623 = vmatpush.bf16.msrb.mxu2 %v3260_v6  ;;  %v4696_v6 = vld [vmem:[#allocation5 + $0x434] sm:$0xf0]  ;;  %v3308_v15 = vor.u32 %v4602_v7, %v3305_v9  ;;  %v4642_v9 = vld [vmem:[#allocation5 + $0x28c] sm:$0xf] }
  0xa9   :  { %1638 = vmatpush.bf16.msrb.mxu0 %v3372_v24  ;;  %v3672_v14 = vor.u32 %v4696_v6, %v3671_v5  ;;  %v3513_v24 = vld [vmem:[#allocation5 + $0x2f8] sm:$0xf0]  ;;  %v4710_v5 = vld [vmem:[#allocation5 + $0x4ac] sm:$0xf] }
  0xaa   :  { %1583 = vmatpush.bf16.msra.mxu1 %v3736_v23  ;;  %v4654_v23 = vld [vmem:[#allocation5 + $0x2ec] sm:$0xf]  ;;  %v3737_v6 = vld [vmem:[#allocation5 + $0x4b8] sm:$0xf0] }
  0xab   :  { %1596 = vmatpush.bf16.msrb.mxu3 %v3880_v20  ;;  %v4598_v20 = vld [vmem:[#allocation5 + $0x12c] sm:$0xf]  ;;  %v3516_v34 = vor.u32 %v4654_v23, %v3513_v24 }
  0xac   :  { %1624 = vmatpush.bf16.msrb.mxu2 %v3244_v19  ;;  %v4692_v19 = vld [vmem:[#allocation5 + $0x414] sm:$0xf0]  ;;  %v3292_v30 = vor.u32 %v4598_v20, %v3289_v21  ;;  %v4638_v21 = vld [vmem:[#allocation5 + $0x26c] sm:$0xf] }
  0xad   :  { %1639 = vmatpush.bf16.msrb.mxu0 %v3356_v36  ;;  %v3656_v29 = vor.u32 %v4692_v19, %v3655_v18  ;;  %v3769_v36 = vld [vmem:[#allocation5 + $0x4f8] sm:$0xf0]  ;;  %v4706_v18 = vld [vmem:[#allocation5 + $0x48c] sm:$0xf] }
  0xae   :  { %1584 = vmatpush.bf16.msra.mxu1 %v3720_v35  ;;  %v4718_v35 = vld [vmem:[#allocation5 + $0x4ec] sm:$0xf]  ;;  %v3721_v19 = vld [vmem:[#allocation5 + $0x498] sm:$0xf0] }
  0xaf   :  { %1597 = vmatpush.bf16.msrb.mxu3 %v3864_v32  ;;  %v4686_v32 = vld [vmem:[#allocation5 + $0x3ec] sm:$0xf]  ;;  %v3772_v48 = vor.u32 %v4718_v35, %v3769_v36 }
  0xb0   :  { %1625 = vmatpush.bf16.msrb.mxu2 %v3228_v31  ;;  %3919 = vmatmul.msk.bf16.vlgmr.msra.gmra.mxu0 %vm1325_vm0, %v5208_v50  ;;  %v4724_v31 = vld [vmem:[#allocation5 + $0x514] sm:$0xf0]  ;;  %v3644_v47 = vor.u32 %v4686_v32, %v3641_v33  ;;  %v4738_v23 = vld [vmem:[#allocation5 + $0x58c] sm:$0xf] }
  0xb1   :  { %1640 = vmatpush.bf16.msrb.mxu0 %v3340_v51  ;;  %v3784_v44 = vor.u32 %v4724_v31, %v3783_v26  ;;  %v3500_v51 = vor.u32 %v4650_v38, %v3497_v40  ;;  %v4670_v26 = vld [vmem:[#allocation5 + $0x36c] sm:$0xf]  ;;  %v3561_v40 = vld [vmem:[#allocation5 + $0x358] sm:$0xf0] }
  0xb2   :  { %1585 = vmatpush.bf16.msra.mxu1 %v3704_v49  ;;  %v4682_v49 = vld [vmem:[#allocation5 + $0x3cc] sm:$0xf]  ;;  %v3580_v35 = vor.u32 %v4670_v26, %v3577_v28  ;;  %v4783_v28 = vld [vmem:[#allocation8 + $0xcc] sm:$0xf0] }
  0xb3   :  { %1598 = vmatpush.bf16.msrb.mxu3 %v3848_v46  ;;  %v3897_v46 = vld [vmem:[#allocation5 + $0x5f8] sm:$0xf0]  ;;  %v3628_v0 = vor.u32 %v4682_v49, %v3625_v53  ;;  %v4634_v32 = vld [vmem:[#allocation5 + $0x24c] sm:$0xf] }
  0xb4   :  { %1626 = vmatpush.bf16.msrb.mxu2 %v3212_v45  ;;  %v4750_v45 = vld [vmem:[#allocation5 + $0x5ec] sm:$0xf] }
  0xb5   :  { %1641 = vmatpush.bf16.msrb.mxu0 %v3324_v2  ;;  %v3900_v58 = vor.u32 %v4750_v45, %v3897_v46  ;;  %v4678_v2 = vld [vmem:[#allocation5 + $0x3ac] sm:$0xf]  ;;  %v3417_v46 = vld [vmem:[#allocation5 + $0x238] sm:$0xf0] }
  0xb6   :  { %1586 = vmatpush.bf16.msra.mxu1 %v3688_v1  ;;  %v3756_v1 = vor.u32 %v4714_v56, %v3753_v57  ;;  %v3612_v13 = vor.u32 %v4678_v2, %v3609_v4  ;;  %v4734_v33 = vld [vmem:[#allocation5 + $0x56c] sm:$0xf]  ;;  %v3545_v57 = vld [vmem:[#allocation5 + $0x338] sm:$0xf0] }
  0xb7   :  { %1599 = vmatpush.bf16.msrb.mxu3 %v3832_v62  ;;  %v4746_v62 = vld [vmem:[#allocation5 + $0x5cc] sm:$0xf]  ;;  %v3801_v2 = vld [vmem:[#allocation5 + $0x538] sm:$0xf0] }
  0xb8   :  { %1627 = vmatpush.bf16.msrb.mxu2 %v3196_v61  ;;  %v3481_v61 = vld [vmem:[#allocation5 + $0x2b8] sm:$0xf0]  ;;  %v3884_v7 = vor.u32 %v4746_v62, %v3881_v63  ;;  %v4666_v38 = vld [vmem:[#allocation5 + $0x34c] sm:$0xf] }
  0xb9   :  { %1642 = vmatpush.bf16.msrb.mxu0 %v3308_v15  ;;  %v3484_v3 = vor.u32 %v4646_v59, %v3481_v61  ;;  %v4674_v15 = vld [vmem:[#allocation5 + $0x38c] sm:$0xf]  ;;  %v3564_v49 = vor.u32 %v4666_v38, %v3561_v40  ;;  %v3673_v59 = vld [vmem:[#allocation5 + $0x438] sm:$0xf0]  ;;  %v4003_v38 = vld [vmem:[#allocation8 + $0xa0] sm:$0xf] }
  0xba   :  { %1587 = vmatpush.bf16.msra.mxu1 %v3672_v14  ;;  %v3740_v14 = vor.u32 %v4710_v5, %v3737_v6  ;;  %v3596_v24 = vor.u32 %v4674_v15, %v3593_v17  ;;  %v4630_v45 = vld [vmem:[#allocation5 + $0x22c] sm:$0xf]  ;;  %v3913_v4 = vld [vmem:[#allocation5 + $0x618] sm:$0xf0]  ;;  %v4787_v17 = vld [vmem:[#allocation8 + $0xec] sm:$0xf0] }
  0xbb   :  { %1600 = vmatpush.bf16.msrb.mxu3 %v3816_v11  ;;  %v4742_v11 = vld [vmem:[#allocation5 + $0x5ac] sm:$0xf]  ;;  %v3420_v56 = vor.u32 %v4630_v45, %v3417_v46 }
  0xbc   :  { %1628 = vmatpush.bf16.msrb.mxu2 %v3180_v10  ;;  %v3465_v10 = vld [vmem:[#allocation5 + $0x298] sm:$0xf0]  ;;  %v3868_v20 = vor.u32 %v4742_v11, %v3865_v12  ;;  %v4626_v63 = vld [vmem:[#allocation5 + $0x20c] sm:$0xf] }
  0xbd   :  { %1643 = vmatpush.bf16.msrb.mxu0 %v3292_v30  ;;  %v3468_v16 = vor.u32 %v4642_v9, %v3465_v10  ;;  %v3705_v30 = vld [vmem:[#allocation5 + $0x478] sm:$0xf0]  ;;  %v5238_v9 = vld [vmem:[#allocation7] sm:$0xf] }
  0xbe   :  { %1588 = vmatpush.bf16.msra.mxu1 %v3656_v29  ;;  %v4702_v29 = vld [vmem:[#allocation5 + $0x46c] sm:$0xf]  ;;  %v3529_v12 = vld [vmem:[#allocation5 + $0x318] sm:$0xf0] }
  0xbf   :  { %1601 = vmatpush.bf16.msrb.mxu3 %v3800_v25  ;;  %v3724_v25 = vor.u32 %v4706_v18, %v3721_v19  ;;  %v3708_v36 = vor.u32 %v4702_v29, %v3705_v30  ;;  %v4722_v18 = vld [vmem:[#allocation5 + $0x50c] sm:$0xf] }
  0xc0   :  { %1629 = vmatpush.bf16.msrb.mxu2 %v3164_v22  ;;  %v3449_v22 = vld [vmem:[#allocation5 + $0x278] sm:$0xf0]  ;;  %v1338_v53 = vpop.f32.mrf.mxu0 }
  0xc1   :  { %1589 = vmatmul.bf16.vlgmr.msra.gmra.mxu1 %v5212_v37  ;;  %1644 = vmatpush.bf16.msrb.mxu0 %v3276_v52  ;;  %v3452_v27 = vor.u32 %v4638_v21, %v3449_v22  ;;  %v4662_v52 = vld [vmem:[#allocation5 + $0x32c] sm:$0xf]  ;;  %v4163_v21 = vld [vmem:[#allocation8 + $0x1e0] sm:$0xf]  ;;  %v4819_v22 = vld [vmem:[#allocation8 + $0x1ec] sm:$0xf0] }
  0xc2   :  { %1651 = vmatpush.bf16.msrb.mxu1 %v3516_v34  ;;  %v3833_v34 = vld [vmem:[#allocation5 + $0x578] sm:$0xf0]  ;;  %v3548_v5 = vor.u32 %v4662_v52, %v3545_v57  ;;  %v4164_v29 = vor.u32 %v4819_v22, %v4163_v21  ;;  %v4115_v52 = vld [vmem:[#allocation8 + $0x180] sm:$0xf]  ;;  %v4795_v21 = vld [vmem:[#allocation8 + $0x12c] sm:$0xf0] }
  0xc3   :  { %1602 = vmatpush.bf16.msrb.mxu3 %v3784_v44  ;;  %v3836_v44 = vor.u32 %v4734_v33, %v3833_v34 }
  0xc4   :  { %1630 = vmatpush.bf16.msrb.mxu2 %v3148_v39  ;;  %1645 = vmatmul.bf16.vlgmr.msrb.gmra.mxu0 %v5204_v8  ;;  %v3433_v8 = vld [vmem:[#allocation5 + $0x258] sm:$0xf0]  ;;  %v5236_v61 = vpop.f32.mrf.mxu1 }
  0xc5   :  { %1693 = vmatpush.bf16.msra.mxu0 %v3900_v58  ;;  %v3436_v39 = vor.u32 %v4634_v32, %v3433_v8  ;;  %v4694_v58 = vld [vmem:[#allocation5 + $0x42c] sm:$0xf]  ;;  %v5240_v10 = vpop.f32.mrf.mxu2  ;;  %v4815_v32 = vld [vmem:[#allocation8 + $0x1cc] sm:$0xf0] }
  0xc6   :  { %1652 = vmatpush.bf16.msrb.mxu1 %v3500_v51  ;;  %1603 = vmatmul.bf16.vlgmr.msrb.gmra.mxu3 %v5214_v42  ;;  %v3692_v51 = vor.u32 %v4698_v41, %v3689_v43  ;;  %v3676_v6 = vor.u32 %v4694_v58, %v3673_v59  ;;  %v4131_v43 = vld [vmem:[#allocation8 + $0x1a0] sm:$0xf]  ;;  %v4771_v59 = vld [vmem:[#allocation8 + $0x6c] sm:$0xf0] }
  0xc7   :  { %1665 = vmatpush.bf16.msra.mxu3 %v3644_v47  ;;  %1631 = vmatmul.bf16.vlgmr.msrb.gmra.mxu2 %v5198_v55  ;;  %v3849_v55 = vld [vmem:[#allocation5 + $0x598] sm:$0xf0]  ;;  %v4730_v47 = vld [vmem:[#allocation5 + $0x54c] sm:$0xf]  ;;  %v1380_v33 = vpop.f32.mrf.mxu3  ;;  %v3971_v58 = vld [vmem:[#allocation8 + $0x60] sm:$0xf] }
  0xc8   :  { %1679 = vmatpush.bf16.msra.mxu2 %v3772_v48  ;;  %v3852_v31 = vor.u32 %v4738_v23, %v3849_v55  ;;  %v3817_v48 = vld [vmem:[#allocation5 + $0x558] sm:$0xf0]  ;;  %v1340_v30 = vpop.f32.mrf.mxu0 }
  0xc9   :  { %1694 = vmatpush.bf16.msra.mxu0 %v3884_v7  ;;  %v3820_v62 = vor.u32 %v4730_v47, %v3817_v48  ;;  %v4658_v7 = vld [vmem:[#allocation5 + $0x30c] sm:$0xf]  ;;  %v3987_v47 = vld [vmem:[#allocation8 + $0x80] sm:$0xf]  ;;  %v4775_v48 = vld [vmem:[#allocation8 + $0x8c] sm:$0xf0] }
  0xca   :  { %1653 = vmatpush.bf16.msrb.mxu1 %v3484_v3  ;;  %v4754_v3 = vld [vmem:[#allocation5 + $0x60c] sm:$0xf]  ;;  %v3532_v23 = vor.u32 %v4658_v7, %v3529_v12 }
  0xcb   :  { %1666 = vmatpush.bf16.msra.mxu3 %v3628_v0  ;;  %v3401_v0 = vld [vmem:[#allocation5 + $0x218] sm:$0xf0]  ;;  %v3916_v19 = vor.u32 %v4754_v3, %v3913_v4  ;;  %v3955_v4 = vld [vmem:[#allocation8 + $0x40] sm:$0xf] }
  0xcc   :  { %1680 = vmatpush.bf16.msra.mxu2 %v3756_v1  ;;  %v4726_v1 = vld [vmem:[#allocation5 + $0x52c] sm:$0xf]  ;;  %v3404_v11 = vor.u32 %v4626_v63, %v3401_v0  ;;  %v1354_v8 = vpop.f32.mrf.mxu1  ;;  %v4099_v63 = vld [vmem:[#allocation8 + $0x160] sm:$0xf]  ;;  %v4803_v0 = vld [vmem:[#allocation8 + $0x16c] sm:$0xf0] }
  0xcd   :  { %1695 = vmatpush.bf16.msra.mxu0 %v3868_v20  ;;  %v3804_v15 = vor.u32 %v4726_v1, %v3801_v2  ;;  %v3785_v20 = vld [vmem:[#allocation5 + $0x518] sm:$0xf0]  ;;  %v1368_v41 = vpop.f32.mrf.mxu2  ;;  %v3972_v1 = vor.u32 %v4771_v59, %v3971_v58  ;;  %v4847_v58 = vld [vmem:[#allocation8 + $0x2cc] sm:$0xf0]  ;;  %v4773_v59 = vld [vmem:[#allocation8 + $0x84] sm:$0xf] }
  0xce   :  { %1654 = vmatpush.bf16.msrb.mxu1 %v3468_v16  ;;  %v4035_v16 = vld [vmem:[#allocation8 + $0xe0] sm:$0xf]  ;;  %v3788_v26 = vor.u32 %v4722_v18, %v3785_v20  ;;  %v4763_v18 = vld [vmem:[#allocation8 + $0x2c] sm:$0xf0] }
  0xcf   :  { %1667 = vmatpush.bf16.msra.mxu3 %v3612_v13  ;;  %v4690_v13 = vld [vmem:[#allocation5 + $0x40c] sm:$0xf]  ;;  %v4067_v20 = vld [vmem:[#allocation8 + $0x120] sm:$0xf] }
  0xd0   :  { %1681 = vmatpush.bf16.msra.mxu2 %v3740_v14  ;;  %v3657_v14 = vld [vmem:[#allocation5 + $0x418] sm:$0xf0] }
  0xd1   :  { %1696 = vmatpush.bf16.msra.mxu0 %v3852_v31  ;;  %v3660_v55 = vor.u32 %v4690_v13, %v3657_v14  ;;  %v4147_v31 = vld [vmem:[#allocation8 + $0x1c0] sm:$0xf] }
  0xd2   :  { %1655 = vmatpush.bf16.msrb.mxu1 %v3452_v27  ;;  %v4019_v27 = vld [vmem:[#allocation8 + $0xc0] sm:$0xf]  ;;  %v4148_v40 = vor.u32 %v4815_v32, %v4147_v31  ;;  %v4817_v32 = vld [vmem:[#allocation8 + $0x1e4] sm:$0xf] }
  0xd3   :  { %1668 = vmatpush.bf16.msra.mxu3 %v3596_v24  ;;  %v4036_v24 = vor.u32 %v4787_v17, %v4035_v16  ;;  %v4020_v34 = vor.u32 %v4783_v28, %v4019_v27  ;;  %v3939_v17 = vld [vmem:[#allocation8 + $0x20] sm:$0xf]  ;;  %v4785_v27 = vld [vmem:[#allocation8 + $0xe4] sm:$0xf]  ;;  %v4037_v28 = vld [vmem:[#allocation8 + $0xf0] sm:$0xf0] }
  0xd4   :  { %1682 = vmatpush.bf16.msra.mxu2 %v3724_v25  ;;  %v337_v25 = vperm.slane %v5238_v9, 0 }
  0xd5   :  { %1697 = vmatpush.bf16.msra.mxu0 %v3836_v44  ;;  %v4811_v44 = vld [vmem:[#allocation8 + $0x1ac] sm:$0xf0] }
  0xd6   :  { %1656 = vmatpush.bf16.msrb.mxu1 %v3436_v39  ;;  %v4779_v39 = vld [vmem:[#allocation8 + $0xac] sm:$0xf0] }
  0xd7   :  { %1669 = vmatpush.bf16.msra.mxu3 %v3580_v35  ;;  %v1339_v35 = vadd.f32 %v1338_v53, %v337_v25  ;;  %v4807_v53 = vld [vmem:[#allocation8 + $0x18c] sm:$0xf0] }
  0xd8   :  { %1683 = vmatpush.bf16.msra.mxu2 %v3708_v36  ;;  %v1341_v36 = vadd.f32 %v1340_v30, %v337_v25  ;;  %v3923_v25 = vld [vmem:[#allocation8] sm:$0xf]  ;;  %v4791_v30 = vld [vmem:[#allocation8 + $0x10c] sm:$0xf0] }
  0xd9   :  { %1698 = vmatpush.bf16.msra.mxu0 %v3820_v62  ;;  %v1353_v45 = vadd.f32 %v5236_v61, %v1339_v35  ;;  %v1382_v62 = vpop.f32.mrf.mxu3  ;;  %v1422_v61 = vpop.f32.mrf.mxu2 }
  0xda   :  { %1657 = vmatpush.bf16.msrb.mxu1 %v3420_v56  ;;  %v1355_v46 = vadd.f32 %v1354_v8, %v1341_v36  ;;  %v4165_v8 = vld [vmem:[#allocation8 + $0x1f0] sm:$0xf0]  ;;  %v4040_v36 = vor.u32 %v4785_v27, %v4037_v28  ;;  %v4227_v27 = vld [vmem:[#allocation8 + $0x260] sm:$0xf]  ;;  %v4761_v28 = vld [vmem:[#allocation8 + $0x24] sm:$0xf] }
  0xdb   :  { %1670 = vmatpush.bf16.msra.mxu3 %v3564_v49  ;;  %v4132_v49 = vor.u32 %v4811_v44, %v4131_v43  ;;  %v1367_v57 = vadd.f32 %v5240_v10, %v1353_v45  ;;  %v4799_v10 = vld [vmem:[#allocation8 + $0x14c] sm:$0xf0]  ;;  %v4813_v44 = vld [vmem:[#allocation8 + $0x1c4] sm:$0xf] }
  0xdc   :  { %1684 = vmatpush.bf16.msra.mxu2 %v3692_v51 }
  0xdd   :  { %1699 = vmatpush.bf16.msra.mxu0 %v3804_v15  ;;  %v1394_v51 = vpop.f32.mrf.mxu0  ;;  %v1381_v2 = vadd.f32 %v1380_v33, %v1367_v57 }
  0xde   :  { %1658 = vmatpush.bf16.msrb.mxu1 %v3404_v11  ;;  %v1408_v56 = vpop.f32.mrf.mxu1  ;;  %v4083_v11 = vld [vmem:[#allocation8 + $0x140] sm:$0xf] }
  0xdf   :  { %1671 = vmatpush.bf16.msra.mxu3 %v3548_v5  ;;  %v4767_v5 = vld [vmem:[#allocation8 + $0x4c] sm:$0xf0]  ;;  %v1395_v12 = vadd.f32 %v1394_v51, %v1381_v2  ;;  %v4005_v51 = vld [vmem:[#allocation8 + $0xb0] sm:$0xf0] }
  0xe0   :  { %1685 = vmatpush.bf16.msra.mxu2 %v3676_v6  ;;  %v4100_v6 = vor.u32 %v4803_v0, %v4099_v63  ;;  %v3956_v15 = vor.u32 %v4767_v5, %v3955_v4  ;;  %v4117_v2 = vld [vmem:[#allocation8 + $0x190] sm:$0xf0]  ;;  %v4259_v4 = vld [vmem:[#allocation8 + $0x2a0] sm:$0xf]  ;;  %v4843_v5 = vld [vmem:[#allocation8 + $0x2ac] sm:$0xf0] }
  0xe1   :  { %1659 = vmatmul.bf16.vlgmr.msrb.gmra.mxu1 %v5196_v54  ;;  %1700 = vmatpush.bf16.msra.mxu0 %v3788_v26  ;;  %v4004_v54 = vor.u32 %v4779_v39, %v4003_v38  ;;  %v1409_v22 = vadd.f32 %v1408_v56, %v1395_v12  ;;  %v4759_v26 = vld [vmem:[#allocation8 + $0xc] sm:$0xf0]  ;;  %v4781_v39 = vld [vmem:[#allocation8 + $0xc4] sm:$0xf] }
  0xe2   :  { %1714 = vmatpush.bf16.msra.mxu1 %v3916_v19  ;;  %v4084_v19 = vor.u32 %v4799_v10, %v4083_v11  ;;  %v3924_v33 = vor.u32 %v4759_v26, %v3923_v25  ;;  %v4809_v56 = vld [vmem:[#allocation8 + $0x1a4] sm:$0xf]  ;;  %v4260_v10 = vor.u32 %v4843_v5, %v4259_v4 }
  0xe3   :  { %1672 = vmatpush.bf16.msra.mxu3 %v3532_v23  ;;  %v1424_v23 = vpop.f32.mrf.mxu2  ;;  %v1423_v31 = vadd.f32 %v1422_v61, %v1409_v22  ;;  %v4801_v12 = vld [vmem:[#allocation8 + $0x164] sm:$0xf] }
  0xe4   :  { %1686 = vmatpush.bf16.msra.mxu2 %v3660_v55  ;;  %1701 = vmatmul.bf16.vlgmr.msra.gmra.mxu0 %v5214_v42  ;;  %v4116_v42 = vor.u32 %v4807_v53, %v4115_v52  ;;  %v3940_v55 = vor.u32 %v4763_v18, %v3939_v17  ;;  %v3957_v17 = vld [vmem:[#allocation8 + $0x50] sm:$0xf0]  ;;  %v4797_v22 = vld [vmem:[#allocation8 + $0x144] sm:$0xf] }
  0xe5   :  { %v1396_v7 = vpop.f32.mrf.mxu0  ;;  %v5251_v35 = vpop.f32.mrf.mxu3  ;;  %v1721_v43 = vmax.f32 %v1423_v31, 0.0 }
  0xe6   :  { %2525 = vmatpush.bf16.msrb.mxu1 %v4164_v29  ;;  %1673 = vmatmul.bf16.vlgmr.msra.gmra.mxu3 %v5200_v60  ;;  %v3988_v60 = vor.u32 %v4775_v48, %v3987_v47  ;;  %v1410_v14 = vpop.f32.mrf.mxu1  ;;  %v4051_v29 = vld [vmem:[#allocation8 + $0x100] sm:$0xf]  ;;  %v4851_v48 = vld [vmem:[#allocation8 + $0x2ec] sm:$0xf0] }
  0xe7   :  { %2511 = vmatpush.bf16.msrb.mxu3 %v4036_v24  ;;  %1687 = vmatmul.bf16.vlgmr.msra.gmra.mxu2 %v5212_v37  ;;  %v1369_v37 = vadd.f32 %v1368_v41, %v1355_v46  ;;  %v4052_v38 = vor.u32 %v4791_v30, %v4051_v29  ;;  %v4168_v41 = vor.u32 %v4817_v32, %v4165_v8  ;;  %v4291_v47 = vld [vmem:[#allocation8 + $0x2e0] sm:$0xf]  ;;  %v3941_v29 = vld [vmem:[#allocation8 + $0x30] sm:$0xf0]  ;;  %v4793_v8 = vld [vmem:[#allocation8 + $0x124] sm:$0xf] }
  0xe8   :  { %v4292_v53 = vor.u32 %v4851_v48, %v4291_v47  ;;  %v4788_v48 = vld [vmem:[#allocation8 + $0xf4] sm:$0xf0] }
  0xe9   :  { %v1383_v3 = vadd.f32 %v1382_v62, %v1369_v37  ;;  %v4275_v37 = vld [vmem:[#allocation8 + $0x2c0] sm:$0xf] }
  0xea   :  { %2526 = vmatpush.bf16.msrb.mxu1 %v4148_v40  ;;  %v4021_v40 = vld [vmem:[#allocation8 + $0xd0] sm:$0xf0]  ;;  %2539 = vmatpush.bf16.msrb.mxu2 %v4292_v53  ;;  %v4276_v61 = vor.u32 %v4847_v58, %v4275_v37  ;;  %v4827_v37 = vld [vmem:[#allocation8 + $0x22c] sm:$0xf0] }
  0xeb   :  { %2512 = vmatpush.bf16.msrb.mxu3 %v4020_v34  ;;  %v1397_v13 = vadd.f32 %v1396_v7, %v1383_v3  ;;  %v4024_v46 = vor.u32 %v4781_v39, %v4021_v40  ;;  %v1450_v63 = vpop.f32.mrf.mxu2  ;;  %v3973_v7 = vld [vmem:[#allocation8 + $0x70] sm:$0xf0]  ;;  %v4211_v39 = vld [vmem:[#allocation8 + $0x240] sm:$0xf]  ;;  %v4831_v40 = vld [vmem:[#allocation8 + $0x24c] sm:$0xf0] }
  0xed   :  { %v1411_v16 = vadd.f32 %v1410_v14, %v1397_v13  ;;  %v1438_v0 = vpop.f32.mrf.mxu3  ;;  %v4101_v13 = vld [vmem:[#allocation8 + $0x170] sm:$0xf0] }
  0xee   :  { %2527 = vmatpush.bf16.msrb.mxu1 %v4132_v49  ;;  %v4777_v49 = vld [vmem:[#allocation8 + $0xa4] sm:$0xf]  ;;  %2540 = vmatpush.bf16.msrb.mxu2 %v4276_v61  ;;  %v4104_v18 = vor.u32 %v4801_v12, %v4101_v13  ;;  %v4027_v61 = vld [vmem:[#allocation8 + $0xc8] sm:$0xf]  ;;  %v4780_v13 = vld [vmem:[#allocation8 + $0xb4] sm:$0xf0] }
  0xef   :  { %2513 = vmatpush.bf16.msrb.mxu3 %v4004_v54  ;;  %v1425_v24 = vadd.f32 %v1424_v23, %v1411_v16  ;;  %v4149_v54 = vld [vmem:[#allocation8 + $0x1d0] sm:$0xf0]  ;;  %v4008_v57 = vor.u32 %v4777_v49, %v4005_v51  ;;  %v4765_v16 = vld [vmem:[#allocation8 + $0x44] sm:$0xf]  ;;  %v4011_v12 = vld [vmem:[#allocation8 + $0xa8] sm:$0xf] }
  0xf0   :  { %v4152_v52 = vor.u32 %v4813_v44, %v4149_v54  ;;  %v4085_v23 = vld [vmem:[#allocation8 + $0x150] sm:$0xf0]  ;;  %v3960_v26 = vor.u32 %v4765_v16, %v3957_v17  ;;  %v4043_v44 = vld [vmem:[#allocation8 + $0xe8] sm:$0xf]  ;;  %v4789_v49 = vld [vmem:[#allocation8 + $0x104] sm:$0xf] }
  0xf1   :  { %3920 = vmatmul.msk.bf16.vlgmr.msra.gmra.mxu1 %vm1325_vm0, %v5208_v50  ;;  %v4068_v50 = vor.u32 %v4795_v21, %v4067_v20  ;;  %v1725_v34 = vmax.f32 %v1425_v24, 0.0  ;;  %v338_v24 = vperm.slane %v5238_v9, 1  ;;  %v4088_v30 = vor.u32 %v4797_v22, %v4085_v23  ;;  %v4053_v51 = vld [vmem:[#allocation8 + $0x110] sm:$0xf0] }
  0xf2   :  { %2528 = vmatpush.bf16.msrb.mxu1 %v4116_v42  ;;  %v3989_v42 = vld [vmem:[#allocation8 + $0x90] sm:$0xf0]  ;;  %2541 = vmatpush.bf16.msrb.mxu2 %v4260_v10 }
  0xf3   :  { %2514 = vmatpush.bf16.msrb.mxu3 %v3988_v60  ;;  %v5253_v45 = vpack.c.bf16 %v1725_v34, %v1721_v43  ;;  %v4133_v60 = vld [vmem:[#allocation8 + $0x1b0] sm:$0xf0]  ;;  %v3992_v3 = vor.u32 %v4773_v59, %v3989_v42  ;;  %v1452_v25 = vpop.f32.mrf.mxu2  ;;  %v1437_v34 = vadd.f32 %v5251_v35, %v338_v24  ;;  %v4044_v59 = vor.u32 %v4788_v48, %v4043_v44  ;;  %v3963_v44 = vld [vmem:[#allocation8 + $0x48] sm:$0xf]  ;;  %v4768_v48 = vld [vmem:[#allocation8 + $0x54] sm:$0xf0] }
  0xf4   :  { %v4136_v62 = vor.u32 %v4809_v56, %v4133_v60  ;;  %v3925_v43 = vld [vmem:[#allocation8 + $0x10] sm:$0xf0]  ;;  %v4056_v42 = vor.u32 %v4789_v49, %v4053_v51  ;;  %v4837_v49 = vld [vmem:[#allocation8 + $0x284] sm:$0xf] }
  0xf5   :  { %v4277_v22 = vld [vmem:[#allocation8 + $0x2d0] sm:$0xf0] }
  0xf6   :  { %2529 = vmatpush.bf16.msrb.mxu1 %v4100_v6  ;;  %v4769_v6 = vld [vmem:[#allocation8 + $0x64] sm:$0xf] }
  0xf7   :  { %2515 = vmatpush.bf16.msrb.mxu3 %v3972_v1  ;;  %v4805_v1 = vld [vmem:[#allocation8 + $0x184] sm:$0xf]  ;;  %v3976_v14 = vor.u32 %v4769_v6, %v3973_v7 }
  0xf8   :  { %v4120_v11 = vor.u32 %v4805_v1, %v4117_v2  ;;  %v4849_v7 = vld [vmem:[#allocation8 + $0x2e4] sm:$0xf] }
  0xfa   :  { %2530 = vmatpush.bf16.msrb.mxu1 %v4084_v19  ;;  %v4839_v19 = vld [vmem:[#allocation8 + $0x28c] sm:$0xf0] }
  0xfb   :  { %2516 = vmatpush.bf16.msrb.mxu3 %v3956_v15  ;;  %v4243_v15 = vld [vmem:[#allocation8 + $0x280] sm:$0xf] }
  0xfd   :  { %v1464_v20 = vpop.f32.mrf.mxu0 }
  0xfe   :  { %2531 = vmatpush.bf16.msrb.mxu1 %v4068_v50  ;;  %v4835_v50 = vld [vmem:[#allocation8 + $0x26c] sm:$0xf0]  ;;  %v1478_v32 = vpop.f32.mrf.mxu1 }
  0xff   :  { %2517 = vmatpush.bf16.msrb.mxu3 %v3940_v55  ;;  %v4244_v55 = vor.u32 %v4839_v19, %v4243_v15  ;;  %v4228_v31 = vor.u32 %v4835_v50, %v4227_v27  ;;  %v3995_v19 = vld [vmem:[#allocation8 + $0x88] sm:$0xf] }
 0x101   :  { %2542 = vmatpush.bf16.msrb.mxu2 %v4244_v55  ;;  %v4776_v55 = vld [vmem:[#allocation8 + $0x94] sm:$0xf0] }
 0x102   :  { %2532 = vmatpush.bf16.msrb.mxu1 %v4052_v38  ;;  %v3944_v38 = vor.u32 %v4761_v28, %v3941_v29  ;;  %v3996_v29 = vor.u32 %v4776_v55, %v3995_v19  ;;  %v4867_v19 = vld [vmem:[#allocation8 + $0x36c] sm:$0xf0]  ;;  %v4045_v55 = vld [vmem:[#allocation8 + $0xf8] sm:$0xf0] }
 0x103   :  { %2518 = vmatpush.bf16.msrb.mxu3 %v3924_v33  ;;  %v4069_v33 = vld [vmem:[#allocation8 + $0x130] sm:$0xf0] }
 0x104   :  { %v4072_v54 = vor.u32 %v4793_v8, %v4069_v33  ;;  %v4772_v33 = vld [vmem:[#allocation8 + $0x74] sm:$0xf0] }
 0x105   :  { %v5256_v21 = vpop.f32.mrf.mxu3  ;;  %2543 = vmatpush.bf16.msrb.mxu2 %v4228_v31  ;;  %v1466_v56 = vpop.f32.mrf.mxu0  ;;  %v4841_v31 = vld [vmem:[#allocation8 + $0x2a4] sm:$0xf] }
 0x106   :  { %2581 = vmatpush.bf16.msra.mxu1 %v4168_v41  ;;  %2519 = vmatmul.bf16.vlgmr.msrb.gmra.mxu3 %v5253_v45  ;;  %v4757_v41 = vld [vmem:[#allocation8 + $0x4] sm:$0xf]  ;;  %v1480_v2 = vpop.f32.mrf.mxu1 }
 0x107   :  { %2567 = vmatpush.bf16.msra.mxu3 %v4040_v36  ;;  %v1439_v36 = vadd.f32 %v1438_v0, %v338_v24  ;;  %v3928_v60 = vor.u32 %v4757_v41, %v3925_v43  ;;  %v4784_v0 = vld [vmem:[#allocation8 + $0xd4] sm:$0xf0] }
 0x108   :  { %v4028_v5 = vor.u32 %v4784_v0, %v4027_v61  ;;  %v4820_v41 = vld [vmem:[#allocation8 + $0x1f4] sm:$0xf0]  ;;  %v4229_v61 = vld [vmem:[#allocation8 + $0x270] sm:$0xf0] }
 0x109   :  { %v1453_v53 = vadd.f32 %v1452_v25, %v1439_v36  ;;  %v4419_v25 = vld [vmem:[#allocation8 + $0x3e0] sm:$0xf] }
 0x10a   :  { %2582 = vmatpush.bf16.msra.mxu1 %v4152_v52  ;;  %v1451_v52 = vadd.f32 %v1450_v63, %v1437_v34  ;;  %v1506_v35 = vpop.f32.mrf.mxu2  ;;  %v4179_v63 = vld [vmem:[#allocation8 + $0x200] sm:$0xf] }
 0x10b   :  { %2568 = vmatpush.bf16.msra.mxu3 %v4024_v46  ;;  %v4212_v46 = vor.u32 %v4831_v40, %v4211_v39  ;;  %v1467_v1 = vadd.f32 %v1466_v56, %v1453_v53  ;;  %v4403_v36 = vld [vmem:[#allocation8 + $0x3c0] sm:$0xf]  ;;  %v4171_v40 = vld [vmem:[#allocation8 + $0x1e8] sm:$0xf]  ;;  %v4875_v56 = vld [vmem:[#allocation8 + $0x3ac] sm:$0xf0] }
 0x10c   :  { %v1465_v58 = vadd.f32 %v1464_v20, %v1451_v52  ;;  %v4845_v20 = vld [vmem:[#allocation8 + $0x2c4] sm:$0xf]  ;;  %v4172_v51 = vor.u32 %v4820_v41, %v4171_v40  ;;  %v4245_v52 = vld [vmem:[#allocation8 + $0x290] sm:$0xf0]  ;;  %v4387_v53 = vld [vmem:[#allocation8 + $0x3a0] sm:$0xf] }
 0x10d   :  { %v1494_v47 = vpop.f32.mrf.mxu3  ;;  %2544 = vmatpush.bf16.msrb.mxu2 %v4212_v46  ;;  %v1481_v16 = vadd.f32 %v1480_v2, %v1467_v1  ;;  %v4280_v24 = vor.u32 %v4845_v20, %v4277_v22  ;;  %v4764_v1 = vld [vmem:[#allocation8 + $0x34] sm:$0xf0] }
 0x10e   :  { %2583 = vmatpush.bf16.msra.mxu1 %v4136_v62  ;;  %v1479_v4 = vadd.f32 %v1478_v32, %v1465_v58  ;;  %v4261_v32 = vld [vmem:[#allocation8 + $0x2b0] sm:$0xf0]  ;;  %v4388_v58 = vor.u32 %v4875_v56, %v4387_v53  ;;  %v4808_v22 = vld [vmem:[#allocation8 + $0x194] sm:$0xf0]  ;;  %v339_v53 = vperm.slane %v5238_v9, 2 }
 0x10f   :  { %2569 = vmatpush.bf16.msra.mxu3 %v4008_v57  ;;  %v4195_v57 = vld [vmem:[#allocation8 + $0x220] sm:$0xf]  ;;  %v1495_v17 = vadd.f32 %v1494_v47, %v1481_v16  ;;  %v4264_v34 = vor.u32 %v4841_v31, %v4261_v32  ;;  %v4123_v16 = vld [vmem:[#allocation8 + $0x188] sm:$0xf]  ;;  %v4804_v31 = vld [vmem:[#allocation8 + $0x174] sm:$0xf0] }
 0x110   :  { %v4196_v62 = vor.u32 %v4827_v37, %v4195_v57  ;;  %v1493_v15 = vadd.f32 %v5256_v21, %v1479_v4  ;;  %v4816_v57 = vld [vmem:[#allocation8 + $0x1d4] sm:$0xf0]  ;;  %v4248_v37 = vor.u32 %v4837_v49, %v4245_v52  ;;  %v4139_v4 = vld [vmem:[#allocation8 + $0x1a8] sm:$0xf]  ;;  %v4782_v32 = vld [vmem:[#allocation8 + $0xcc] sm:$0xf] }
 0x111   :  { %v4013_v49 = vld [vmem:[#allocation8 + $0xb8] sm:$0xf0] }
 0x112   :  { %2584 = vmatpush.bf16.msra.mxu1 %v4120_v11  ;;  %2545 = vmatpush.bf16.msrb.mxu2 %v4196_v62  ;;  %v4293_v11 = vld [vmem:[#allocation8 + $0x2f0] sm:$0xf0]  ;;  %v1508_v23 = vpop.f32.mrf.mxu2  ;;  %v1507_v27 = vadd.f32 %v1506_v35, %v1493_v15  ;;  %v4833_v62 = vld [vmem:[#allocation8 + $0x264] sm:$0xf] }
 0x113   :  { %2570 = vmatpush.bf16.msra.mxu3 %v3992_v3  ;;  %v4823_v3 = vld [vmem:[#allocation8 + $0x20c] sm:$0xf0]  ;;  %v1509_v28 = vadd.f32 %v1508_v23, %v1495_v17  ;;  %v4232_v2 = vor.u32 %v4833_v62, %v4229_v61  ;;  %v4786_v23 = vld [vmem:[#allocation8 + $0xec] sm:$0xf]  ;;  %v3997_v61 = vld [vmem:[#allocation8 + $0x98] sm:$0xf0] }
 0x114   :  { %v4180_v6 = vor.u32 %v4823_v3, %v4179_v63  ;;  %v4371_v63 = vld [vmem:[#allocation8 + $0x380] sm:$0xf]  ;;  %v4871_v3 = vld [vmem:[#allocation8 + $0x38c] sm:$0xf0] }
 0x115   :  { %v1520_v10 = vpop.f32.mrf.mxu3  ;;  %v4855_v62 = vld [vmem:[#allocation8 + $0x30c] sm:$0xf0] }
 0x116   :  { %2585 = vmatpush.bf16.msra.mxu1 %v4104_v18  ;;  %2546 = vmatpush.bf16.msrb.mxu2 %v4180_v6  ;;  %v4012_v18 = vor.u32 %v4780_v13, %v4011_v12  ;;  %v1521_v21 = vadd.f32 %v1520_v10, %v1507_v27  ;;  %v4372_v6 = vor.u32 %v4871_v3, %v4371_v63  ;;  %v4760_v12 = vld [vmem:[#allocation8 + $0x14] sm:$0xf0]  ;;  %v4829_v13 = vld [vmem:[#allocation8 + $0x244] sm:$0xf]  ;;  %v4197_v27 = vld [vmem:[#allocation8 + $0x230] sm:$0xf0] }
 0x117   :  { %2571 = vmatpush.bf16.msra.mxu3 %v3976_v14  ;;  %v4296_v14 = vor.u32 %v4849_v7, %v4293_v11  ;;  %v3931_v11 = vld [vmem:[#allocation8 + $0x8] sm:$0xf] }
 0x11a   :  { %2586 = vmatpush.bf16.msra.mxu1 %v4088_v30  ;;  %2595 = vmatpush.bf16.msra.mxu2 %v4296_v14  ;;  %v3979_v30 = vld [vmem:[#allocation8 + $0x68] sm:$0xf]  ;;  %v4213_v14 = vld [vmem:[#allocation8 + $0x250] sm:$0xf0] }
 0x11b   :  { %2572 = vmatpush.bf16.msra.mxu3 %v3960_v26  ;;  %v4883_v26 = vld [vmem:[#allocation8 + $0x3ec] sm:$0xf0]  ;;  %v3980_v47 = vor.u32 %v4772_v33, %v3979_v30  ;;  %v4216_v17 = vor.u32 %v4829_v13, %v4213_v14 }
 0x11c   :  { %v4420_v50 = vor.u32 %v4883_v26, %v4419_v25  ;;  %v3932_v25 = vor.u32 %v4760_v12, %v3931_v11  ;;  %v4825_v26 = vld [vmem:[#allocation8 + $0x224] sm:$0xf]  ;;  %v4863_v30 = vld [vmem:[#allocation8 + $0x34c] sm:$0xf0]  ;;  %v4059_v11 = vld [vmem:[#allocation8 + $0x108] sm:$0xf] }
 0x11d   :  { %v1522_v8 = vpop.f32.mrf.mxu3  ;;  %v5265_v7 = vpop.f32.mrf.mxu0  ;;  %v4200_v33 = vor.u32 %v4825_v26, %v4197_v27  ;;  %v4770_v12 = vld [vmem:[#allocation8 + $0x6c] sm:$0xf] }
 0x11e   :  { %2587 = vmatpush.bf16.msra.mxu1 %v4072_v54  ;;  %2596 = vmatpush.bf16.msra.mxu2 %v4280_v24  ;;  %v1523_v39 = vadd.f32 %v1522_v8, %v1509_v28  ;;  %v1722_v54 = vmax.f32 %v1521_v21, 0.0  ;;  %v1534_v20 = vpop.f32.mrf.mxu1  ;;  %v4048_v28 = vor.u32 %v4786_v23, %v4045_v55  ;;  %v4107_v21 = vld [vmem:[#allocation8 + $0x168] sm:$0xf]  ;;  %v4029_v8 = vld [vmem:[#allocation8 + $0xd8] sm:$0xf0] }
 0x11f   :  { %2573 = vmatpush.bf16.msra.mxu3 %v3944_v38  ;;  %2553 = vmatpush.bf16.msrb.mxu0 %v4420_v50  ;;  %v4879_v38 = vld [vmem:[#allocation8 + $0x3cc] sm:$0xf0]  ;;  %v4124_v50 = vor.u32 %v4808_v22, %v4123_v16  ;;  %v4108_v41 = vor.u32 %v4804_v31, %v4107_v21  ;;  %v1535_v63 = vadd.f32 %v1534_v20, %v339_v53  ;;  %v4877_v16 = vld [vmem:[#allocation8 + $0x3c4] sm:$0xf]  ;;  %v4818_v22 = vld [vmem:[#allocation8 + $0x1ec] sm:$0xf] }
 0x120   :  { %v4404_v43 = vor.u32 %v4879_v38, %v4403_v36  ;;  %v1726_v46 = vmax.f32 %v1523_v39, 0.0  ;;  %v4821_v38 = vld [vmem:[#allocation8 + $0x204] sm:$0xf]  ;;  %v4181_v39 = vld [vmem:[#allocation8 + $0x210] sm:$0xf0] }
 0x121   :  { %v4173_v20 = vld [vmem:[#allocation8 + $0x1f8] sm:$0xf0]  ;;  %v4766_v26 = vld [vmem:[#allocation8 + $0x4c] sm:$0xf]  ;;  %v4389_v21 = vld [vmem:[#allocation8 + $0x3b0] sm:$0xf0] }
 0x122   :  { %2588 = vmatpush.bf16.msra.mxu1 %v4056_v42  ;;  %2597 = vmatpush.bf16.msra.mxu2 %v4264_v34  ;;  %v5262_v35 = vpack.c.bf16 %v1726_v46, %v1722_v54  ;;  %v3947_v42 = vld [vmem:[#allocation8 + $0x28] sm:$0xf]  ;;  %v4323_v54 = vld [vmem:[#allocation8 + $0x320] sm:$0xf]  ;;  %v4859_v46 = vld [vmem:[#allocation8 + $0x32c] sm:$0xf0]  ;;  %v4176_v27 = vor.u32 %v4818_v22, %v4173_v20 }
 0x123   :  { %2574 = vmatpush.bf16.msra.mxu3 %v3928_v60  ;;  %2554 = vmatpush.bf16.msrb.mxu0 %v4404_v43  ;;  %v4155_v60 = vld [vmem:[#allocation8 + $0x1c8] sm:$0xf]  ;;  %v3948_v10 = vor.u32 %v4764_v1, %v3947_v42  ;;  %v4032_v43 = vor.u32 %v4782_v32, %v4029_v8  ;;  %v4324_v52 = vor.u32 %v4859_v46, %v4323_v54  ;;  %v4307_v42 = vld [vmem:[#allocation8 + $0x300] sm:$0xf]  ;;  %v4881_v1 = vld [vmem:[#allocation8 + $0x3e4] sm:$0xf] }
 0x124   :  { %2533 = vmatmul.bf16.vlgmr.msrb.gmra.mxu1 %v5262_v35  ;;  %v4156_v0 = vor.u32 %v4816_v57, %v4155_v60  ;;  %v4075_v60 = vld [vmem:[#allocation8 + $0x128] sm:$0xf]  ;;  %v4796_v57 = vld [vmem:[#allocation8 + $0x134] sm:$0xf0]  ;;  %v4814_v31 = vld [vmem:[#allocation8 + $0x1cc] sm:$0xf] }
 0x125   :  { %v5267_v40 = vpop.f32.mrf.mxu0  ;;  %v4157_v32 = vld [vmem:[#allocation8 + $0x1d8] sm:$0xf0]  ;;  %v4857_v22 = vld [vmem:[#allocation8 + $0x324] sm:$0xf]  ;;  %v4325_v20 = vld [vmem:[#allocation8 + $0x330] sm:$0xf0] }
 0x126   :  { %2575 = vmatmul.bf16.vlgmr.msra.gmra.mxu3 %v5253_v45  ;;  %2637 = vmatpush.bf16.msrb.mxu1 %v4172_v51  ;;  %v4184_v51 = vor.u32 %v4821_v38, %v4181_v39  ;;  %v1536_v56 = vpop.f32.mrf.mxu1  ;;  %v4160_v38 = vor.u32 %v4814_v31, %v4157_v32  ;;  %v3949_v39 = vld [vmem:[#allocation8 + $0x38] sm:$0xf0]  ;;  %v340_v31 = vperm.slane %v5238_v9, 3  ;;  %v4794_v32 = vld [vmem:[#allocation8 + $0x12c] sm:$0xf] }
 0x127   :  { %2623 = vmatpush.bf16.msrb.mxu3 %v4044_v59  ;;  %v3964_v59 = vor.u32 %v4768_v48, %v3963_v44  ;;  %2598 = vmatpush.bf16.msra.mxu2 %v4248_v37  ;;  %v4091_v44 = vld [vmem:[#allocation8 + $0x148] sm:$0xf]  ;;  %v4778_v48 = vld [vmem:[#allocation8 + $0xac] sm:$0xf] }
 0x128   :  { %2555 = vmatpush.bf16.msrb.mxu0 %v4388_v58  ;;  %v4016_v58 = vor.u32 %v4778_v48, %v4013_v49 }
 0x129   :  { %v1548_v36 = vpop.f32.mrf.mxu3 }
 0x12a   :  { %2638 = vmatpush.bf16.msrb.mxu1 %v4156_v0  ;;  %v4308_v0 = vor.u32 %v4855_v62, %v4307_v42  ;;  %v1576_v13 = vpop.f32.mrf.mxu2  ;;  %v4806_v42 = vld [vmem:[#allocation8 + $0x18c] sm:$0xf]  ;;  %v4125_v62 = vld [vmem:[#allocation8 + $0x198] sm:$0xf0] }
 0x12b   :  { %2624 = vmatpush.bf16.msrb.mxu3 %v4028_v5  ;;  %v4812_v5 = vld [vmem:[#allocation8 + $0x1b4] sm:$0xf0]  ;;  %2599 = vmatpush.bf16.msra.mxu2 %v4232_v2  ;;  %v4421_v2 = vld [vmem:[#allocation8 + $0x3f0] sm:$0xf0] }
 0x12c   :  { %v4140_v15 = vor.u32 %v4812_v5, %v4139_v4  ;;  %2556 = vmatpush.bf16.msrb.mxu0 %v4372_v6  ;;  %v4424_v3 = vor.u32 %v4881_v1, %v4421_v2  ;;  %v4076_v5 = vor.u32 %v4796_v57, %v4075_v60  ;;  %v3933_v57 = vld [vmem:[#allocation8 + $0x18] sm:$0xf0] }
 0x12d   :  { %v5272_v4 = vpop.f32.mrf.mxu0 }
 0x12e   :  { %2639 = vmatpush.bf16.msrb.mxu1 %v4140_v15  ;;  %v3981_v15 = vld [vmem:[#allocation8 + $0x78] sm:$0xf0] }
 0x12f   :  { %2625 = vmatpush.bf16.msrb.mxu3 %v4012_v18  ;;  %v4355_v18 = vld [vmem:[#allocation8 + $0x360] sm:$0xf]  ;;  %2600 = vmatpush.bf16.msra.mxu2 %v4216_v17  ;;  %v4405_v17 = vld [vmem:[#allocation8 + $0x3d0] sm:$0xf0] }
 0x130   :  { %v4356_v24 = vor.u32 %v4867_v19, %v4355_v18  ;;  %v1549_v18 = vadd.f32 %v1548_v36, %v1535_v63  ;;  %v1537_v19 = vadd.f32 %v1536_v56, %v339_v53  ;;  %v4408_v23 = vor.u32 %v4877_v16, %v4405_v17  ;;  %v4758_v53 = vld [vmem:[#allocation8 + $0xc] sm:$0xf]  ;;  %v4299_v16 = vld [vmem:[#allocation8 + $0x2e8] sm:$0xf]  ;;  %v4852_v17 = vld [vmem:[#allocation8 + $0x2f4] sm:$0xf0] }
 0x131   :  { %v1550_v14 = vpop.f32.mrf.mxu3  ;;  %v3936_v1 = vor.u32 %v4758_v53, %v3933_v57  ;;  %v4128_v63 = vor.u32 %v4806_v42, %v4125_v62  ;;  %v4836_v53 = vld [vmem:[#allocation8 + $0x274] sm:$0xf0]  ;;  %v4219_v62 = vld [vmem:[#allocation8 + $0x248] sm:$0xf] }
 0x132   :  { %2557 = vmatpush.bf16.msrb.mxu0 %v4356_v24  ;;  %2640 = vmatpush.bf16.msrb.mxu1 %v4124_v50  ;;  %v3965_v50 = vld [vmem:[#allocation8 + $0x58] sm:$0xf0]  ;;  %v1578_v49 = vpop.f32.mrf.mxu2 }
 0x133   :  { %2626 = vmatpush.bf16.msrb.mxu3 %v3996_v29  ;;  %v4339_v29 = vld [vmem:[#allocation8 + $0x340] sm:$0xf]  ;;  %2601 = vmatpush.bf16.msra.mxu2 %v4200_v33  ;;  %v3968_v33 = vor.u32 %v4766_v26, %v3965_v50  ;;  %v4300_v26 = vor.u32 %v4852_v17, %v4299_v16  ;;  %v4283_v50 = vld [vmem:[#allocation8 + $0x2c8] sm:$0xf]  ;;  %v4850_v17 = vld [vmem:[#allocation8 + $0x2ec] sm:$0xf] }
 0x134   :  { %v4340_v34 = vor.u32 %v4863_v30, %v4339_v29  ;;  %2589 = vmatmul.bf16.vlgmr.msra.gmra.mxu1 %v5262_v35  ;;  %v1563_v29 = vadd.f32 %v5265_v7, %v1549_v18  ;;  %v1551_v30 = vadd.f32 %v1550_v14, %v1537_v19  ;;  %v4810_v7 = vld [vmem:[#allocation8 + $0x1ac] sm:$0xf] }
 0x135   :  { %v1620_v46 = vpop.f32.mrf.mxu0 }
 0x136   :  { %2558 = vmatpush.bf16.msrb.mxu0 %v4340_v34  ;;  %2641 = vmatpush.bf16.msrb.mxu1 %v4108_v41  ;;  %v4762_v34 = vld [vmem:[#allocation8 + $0x2c] sm:$0xf]  ;;  %v4869_v41 = vld [vmem:[#allocation8 + $0x384] sm:$0xf]  ;;  %v1565_v54 = vadd.f32 %v5267_v40, %v1551_v30  ;;  %v4309_v30 = vld [vmem:[#allocation8 + $0x310] sm:$0xf0] }
 0x137   :  { %2627 = vmatpush.bf16.msrb.mxu3 %v3980_v47  ;;  %v4800_v47 = vld [vmem:[#allocation8 + $0x154] sm:$0xf0]  ;;  %2602 = vmatpush.bf16.msra.mxu2 %v4184_v51 }
 0x138   :  { %v4092_v37 = vor.u32 %v4800_v47, %v4091_v44  ;;  %v1577_v44 = vadd.f32 %v1576_v13, %v1563_v29  ;;  %v4141_v47 = vld [vmem:[#allocation8 + $0x1b8] sm:$0xf0]  ;;  %v4853_v29 = vld [vmem:[#allocation8 + $0x304] sm:$0xf] }
 0x139   :  { %v4144_v60 = vor.u32 %v4810_v7, %v4141_v47  ;;  %v4251_v7 = vld [vmem:[#allocation8 + $0x288] sm:$0xf]  ;;  %v4840_v47 = vld [vmem:[#allocation8 + $0x294] sm:$0xf0] }
 0x13a   :  { %2559 = vmatpush.bf16.msrb.mxu0 %v4324_v52  ;;  %2642 = vmatpush.bf16.msrb.mxu1 %v4092_v37  ;;  %v3952_v52 = vor.u32 %v4762_v34, %v3949_v39  ;;  %v4865_v37 = vld [vmem:[#allocation8 + $0x364] sm:$0xf] }
 0x13b   :  { %2628 = vmatpush.bf16.msrb.mxu3 %v3964_v59  ;;  %v4774_v59 = vld [vmem:[#allocation8 + $0x8c] sm:$0xf] }
 0x13c   :  { %v4000_v6 = vor.u32 %v4774_v59, %v3997_v61  ;;  %v1579_v59 = vadd.f32 %v1578_v49, %v1565_v54  ;;  %v4061_v54 = vld [vmem:[#allocation8 + $0x118] sm:$0xf0] }
 0x13e   :  { %2560 = vmatpush.bf16.msrb.mxu0 %v4308_v0  ;;  %v1590_v55 = vpop.f32.mrf.mxu1  ;;  %2643 = vmatpush.bf16.msrb.mxu1 %v4076_v5  ;;  %v4341_v5 = vld [vmem:[#allocation8 + $0x350] sm:$0xf0] }
 0x13f   :  { %2629 = vmatpush.bf16.msrb.mxu3 %v3948_v10  ;;  %v4792_v10 = vld [vmem:[#allocation8 + $0x114] sm:$0xf0]  ;;  %v1591_v51 = vadd.f32 %v1590_v55, %v1577_v44  ;;  %v4790_v44 = vld [vmem:[#allocation8 + $0x10c] sm:$0xf] }
 0x140   :  { %v4060_v24 = vor.u32 %v4792_v10, %v4059_v11  ;;  %v4802_v10 = vld [vmem:[#allocation8 + $0x16c] sm:$0xf] }
 0x142   :  { %2609 = vmatpush.bf16.msra.mxu0 %v4424_v3  ;;  %2644 = vmatpush.bf16.msrb.mxu1 %v4060_v24  ;;  %v4861_v3 = vld [vmem:[#allocation8 + $0x344] sm:$0xf]  ;;  %v4798_v24 = vld [vmem:[#allocation8 + $0x14c] sm:$0xf] }
 0x143   :  { %2630 = vmatpush.bf16.msrb.mxu3 %v3932_v25  ;;  %v3984_v25 = vor.u32 %v4770_v12, %v3981_v15  ;;  %v4109_v12 = vld [vmem:[#allocation8 + $0x178] sm:$0xf0]  ;;  %v4344_v13 = vor.u32 %v4861_v3, %v4341_v5  ;;  %v1646_v15 = vpop.f32.mrf.mxu0  ;;  %v4828_v3 = vld [vmem:[#allocation8 + $0x234] sm:$0xf0] }
 0x144   :  { %v4112_v19 = vor.u32 %v4802_v10, %v4109_v12 }
 0x145   :  { %2645 = vmatmul.bf16.vlgmr.msrb.gmra.mxu1 %v5262_v35 }
 0x146   :  { %2631 = vmatmul.bf16.vlgmr.msrb.gmra.mxu3 %v5253_v45  ;;  %2610 = vmatpush.bf16.msra.mxu0 %v4408_v23  ;;  %v1592_v56 = vpop.f32.mrf.mxu1 }
 0x147   :  { %2679 = vmatpush.bf16.msra.mxu3 %v4048_v28  ;;  %v4873_v28 = vld [vmem:[#allocation8 + $0x3a4] sm:$0xf]  ;;  %2693 = vmatpush.bf16.msra.mxu1 %v4176_v27  ;;  %v1593_v0 = vadd.f32 %v1592_v56, %v1579_v59 }
 0x148   :  { %v4392_v8 = vor.u32 %v4873_v28, %v4389_v21  ;;  %v4848_v28 = vld [vmem:[#allocation8 + $0x2d4] sm:$0xf0] }
 0x149   :  { %v1604_v36 = vpop.f32.mrf.mxu3  ;;  %v4284_v34 = vor.u32 %v4848_v28, %v4283_v50  ;;  %v4427_v50 = vld [vmem:[#allocation8 + $0x3e8] sm:$0xf]  ;;  %v4884_v28 = vld [vmem:[#allocation8 + $0x3f4] sm:$0xf0] }
 0x14a   :  { %2611 = vmatpush.bf16.msra.mxu0 %v4392_v8  ;;  %v1605_v40 = vadd.f32 %v1604_v36, %v1591_v51  ;;  %v1632_v18 = vpop.f32.mrf.mxu2  ;;  %v4077_v8 = vld [vmem:[#allocation8 + $0x138] sm:$0xf0]  ;;  %v4844_v36 = vld [vmem:[#allocation8 + $0x2b4] sm:$0xf0]  ;;  %v4252_v51 = vor.u32 %v4840_v47, %v4251_v7  ;;  %v4379_v47 = vld [vmem:[#allocation8 + $0x388] sm:$0xf] }
 0x14b   :  { %2680 = vmatpush.bf16.msra.mxu3 %v4032_v43  ;;  %v4373_v43 = vld [vmem:[#allocation8 + $0x390] sm:$0xf0]  ;;  %2694 = vmatpush.bf16.msra.mxu1 %v4160_v38  ;;  %v4080_v39 = vor.u32 %v4794_v32, %v4077_v8  ;;  %v4842_v32 = vld [vmem:[#allocation8 + $0x2ac] sm:$0xf]  ;;  %v4269_v8 = vld [vmem:[#allocation8 + $0x2b8] sm:$0xf0] }
 0x14c   :  { %v4376_v48 = vor.u32 %v4869_v41, %v4373_v43  ;;  %v1633_v41 = vadd.f32 %v1632_v18, %v340_v31  ;;  %v1648_v43 = vpop.f32.mrf.mxu0  ;;  %v4301_v18 = vld [vmem:[#allocation8 + $0x2f8] sm:$0xf0] }
 0x14d   :  { %v4237_v7 = vld [vmem:[#allocation8 + $0x278] sm:$0xf0] }
 0x14e   :  { %2612 = vmatpush.bf16.msra.mxu0 %v4376_v48  ;;  %v4064_v48 = vor.u32 %v4790_v44, %v4061_v54  ;;  %v1647_v49 = vadd.f32 %v1646_v15, %v1633_v41  ;;  %v4187_v15 = vld [vmem:[#allocation8 + $0x208] sm:$0xf]  ;;  %v4253_v41 = vld [vmem:[#allocation8 + $0x298] sm:$0xf0]  ;;  %v4876_v44 = vld [vmem:[#allocation8 + $0x3b4] sm:$0xf0] }
 0x14f   :  { %2681 = vmatpush.bf16.msra.mxu3 %v4016_v58  ;;  %v4357_v58 = vld [vmem:[#allocation8 + $0x370] sm:$0xf0]  ;;  %2695 = vmatpush.bf16.msra.mxu1 %v4144_v60 }
 0x150   :  { %v4360_v61 = vor.u32 %v4865_v37, %v4357_v58 }
 0x151   :  { %v1606_v2 = vpop.f32.mrf.mxu3 }
 0x152   :  { %v1607_v11 = vadd.f32 %v1606_v2, %v1593_v0  ;;  %2613 = vmatpush.bf16.msra.mxu0 %v4360_v61  ;;  %v4832_v61 = vld [vmem:[#allocation8 + $0x254] sm:$0xf0] }
 0x153   :  { %2682 = vmatpush.bf16.msra.mxu3 %v4000_v6  ;;  %v1619_v6 = vadd.f32 %v5272_v4, %v1605_v40  ;;  %2696 = vmatpush.bf16.msra.mxu1 %v4128_v63  ;;  %v4328_v4 = vor.u32 %v4857_v22, %v4325_v20  ;;  %v4203_v63 = vld [vmem:[#allocation8 + $0x228] sm:$0xf] }
 0x154   :  { %v1621_v14 = vadd.f32 %v1620_v46, %v1607_v11  ;;  %v1634_v46 = vpop.f32.mrf.mxu2  ;;  %v4204_v12 = vor.u32 %v4828_v3, %v4203_v63  ;;  %v4860_v63 = vld [vmem:[#allocation8 + $0x334] sm:$0xf0] }
 0x155   :  { %v1723_v23 = vmax.f32 %v1619_v6, 0.0  ;;  %v1635_v37 = vadd.f32 %v1634_v46, %v340_v31  ;;  %v4428_v31 = vor.u32 %v4884_v28, %v4427_v50  ;;  %v4858_v50 = vld [vmem:[#allocation8 + $0x32c] sm:$0xf]  ;;  %v4333_v28 = vld [vmem:[#allocation8 + $0x338] sm:$0xf0] }
 0x156   :  { %v1727_v55 = vmax.f32 %v1621_v14, 0.0  ;;  %2614 = vmatpush.bf16.msra.mxu0 %v4344_v13 }
 0x157   :  { %2683 = vmatpush.bf16.msra.mxu3 %v3984_v25  ;;  %v4093_v25 = vld [vmem:[#allocation8 + $0x158] sm:$0xf0]  ;;  %2697 = vmatpush.bf16.msra.mxu1 %v4112_v19  ;;  %v1649_v0 = vadd.f32 %v1648_v43, %v1635_v37  ;;  %v4395_v43 = vld [vmem:[#allocation8 + $0x3a8] sm:$0xf] }
 0x158   :  { %v5279_v27 = vpack.c.bf16 %v1727_v55, %v1723_v23  ;;  %v4096_v21 = vor.u32 %v4798_v24, %v4093_v25  ;;  %v4304_v55 = vor.u32 %v4850_v17, %v4301_v18  ;;  %v4846_v25 = vld [vmem:[#allocation8 + $0x2cc] sm:$0xf]  ;;  %v4396_v46 = vor.u32 %v4876_v44, %v4395_v43  ;;  %v4397_v18 = vld [vmem:[#allocation8 + $0x3b8] sm:$0xf0] }
 0x159   :  { %v4874_v17 = vld [vmem:[#allocation8 + $0x3ac] sm:$0xf] }
 0x15a   :  { %2547 = vmatmul.bf16.vlgmr.msrb.gmra.mxu2 %v5279_v27  ;;  %2615 = vmatpush.bf16.msra.mxu0 %v4328_v4  ;;  %v4285_v4 = vld [vmem:[#allocation8 + $0x2d8] sm:$0xf0]  ;;  %v4886_v43 = vld [vmem:[#allocation11 + $0x8] sm:$0xff] }
 0x15b   :  { %2684 = vmatpush.bf16.msra.mxu3 %v3968_v33  ;;  %v4312_v33 = vor.u32 %v4853_v29, %v4309_v30  ;;  %2651 = vmatpush.bf16.msrb.mxu2 %v4300_v26  ;;  %v4288_v30 = vor.u32 %v4846_v25, %v4285_v4  ;;  %v4349_v4 = vld [vmem:[#allocation8 + $0x358] sm:$0xf0]  ;;  %v4898_v44 = vld [vmem:[#allocation11 + $0x68] sm:$0xff] }
 0x15c   :  { %2698 = vmatpush.bf16.msra.mxu1 %v4096_v21 }
 0x15e   :  { %v1660_v38 = vpop.f32.mrf.mxu1  ;;  %2616 = vmatpush.bf16.msra.mxu0 %v4312_v33 }
 0x15f   :  { %2685 = vmatpush.bf16.msra.mxu3 %v3952_v52  ;;  %2652 = vmatpush.bf16.msrb.mxu2 %v4284_v34  ;;  %v4235_v52 = vld [vmem:[#allocation8 + $0x268] sm:$0xf]  ;;  %v1661_v60 = vadd.f32 %v1660_v38, %v1647_v49 }
 0x160   :  { %2699 = vmatpush.bf16.msra.mxu1 %v4080_v39  ;;  %v4236_v59 = vor.u32 %v4836_v53, %v4235_v52  ;;  %v4411_v34 = vld [vmem:[#allocation8 + $0x3c8] sm:$0xf]  ;;  %v4838_v39 = vld [vmem:[#allocation8 + $0x28c] sm:$0xf]  ;;  %v4221_v53 = vld [vmem:[#allocation8 + $0x258] sm:$0xf0] }
 0x161   :  { %v1702_v40 = vpop.f32.mrf.mxu0  ;;  %v4256_v54 = vor.u32 %v4838_v39, %v4253_v41  ;;  %v4830_v52 = vld [vmem:[#allocation8 + $0x24c] sm:$0xf]  ;;  %v4887_v39 = vld [vmem:[#allocation11 + $0x10] sm:$0xff] }
 0x162   :  { %v4899_v41 = vld [vmem:[#allocation11 + $0x70] sm:$0xff] }
 0x163   :  { %2686 = vmatpush.bf16.msra.mxu3 %v3936_v1  ;;  %v4220_v1 = vor.u32 %v4832_v61, %v4219_v62 }
 0x164   :  { %2700 = vmatpush.bf16.msra.mxu1 %v4064_v48  ;;  %v4872_v48 = vld [vmem:[#allocation8 + $0x394] sm:$0xf0] }
 0x166   :  { %2687 = vmatmul.bf16.vlgmr.msra.gmra.mxu3 %v5253_v45  ;;  %v4267_v45 = vld [vmem:[#allocation8 + $0x2a8] sm:$0xf]  ;;  %v1662_v56 = vpop.f32.mrf.mxu1 }
 0x167   :  { %v4268_v9 = vor.u32 %v4844_v36, %v4267_v45  ;;  %2701 = vmatmul.bf16.vlgmr.msra.gmra.mxu1 %v5262_v35  ;;  %v1663_v5 = vadd.f32 %v1662_v56, %v1649_v0  ;;  %v4824_v35 = vld [vmem:[#allocation8 + $0x214] sm:$0xf0]  ;;  %v4272_v36 = vor.u32 %v4842_v32, %v4269_v8  ;;  %v4363_v56 = vld [vmem:[#allocation8 + $0x368] sm:$0xf]  ;;  %v4822_v0 = vld [vmem:[#allocation8 + $0x20c] sm:$0xf] }
 0x168   :  { %v4188_v20 = vor.u32 %v4824_v35, %v4187_v15  ;;  %v4880_v45 = vld [vmem:[#allocation8 + $0x3d4] sm:$0xf0]  ;;  %v4878_v15 = vld [vmem:[#allocation8 + $0x3cc] sm:$0xf]  ;;  %v4413_v35 = vld [vmem:[#allocation8 + $0x3d8] sm:$0xf0] }
 0x169   :  { %2653 = vmatpush.bf16.msrb.mxu2 %v4268_v9  ;;  %v1674_v57 = vpop.f32.mrf.mxu3  ;;  %v1704_v19 = vpop.f32.mrf.mxu0  ;;  %v4412_v38 = vor.u32 %v4880_v45, %v4411_v34  ;;  %v4834_v9 = vld [vmem:[#allocation8 + $0x26c] sm:$0xf]  ;;  %v4892_v32 = vld [vmem:[#allocation11 + $0x38] sm:$0xff]  ;;  %v4891_v8 = vld [vmem:[#allocation11 + $0x30] sm:$0xff] }
 0x16a   :  { %v1688_v58 = vpop.f32.mrf.mxu2  ;;  %v1675_v42 = vadd.f32 %v1674_v57, %v1661_v60  ;;  %2603 = vmatmul.bf16.vlgmr.msra.gmra.mxu2 %v5279_v27  ;;  %v4240_v49 = vor.u32 %v4834_v9, %v4237_v7  ;;  %v4868_v60 = vld [vmem:[#allocation8 + $0x374] sm:$0xf0]  ;;  %v4224_v57 = vor.u32 %v4830_v52, %v4221_v53  ;;  %3007 = vmatpush.bf16.msrb.mxu3 %v4892_v32  ;;  %v4890_v34 = vld [vmem:[#allocation11 + $0x28] sm:$0xff]  ;;  %v4889_v45 = vld [vmem:[#allocation11 + $0x20] sm:$0xff] }
 0x16b   :  { %v4364_v37 = vor.u32 %v4868_v60, %v4363_v56  ;;  %v4908_v9 = vld [vmem:[#allocation11 + $0xb8] sm:$0xff]  ;;  %v4894_v52 = vld [vmem:[#allocation11 + $0x48] sm:$0xff] }
 0x16c   :  { %v1689_v2 = vadd.f32 %v1688_v58, %v1675_v42  ;;  %v4826_v58 = vld [vmem:[#allocation8 + $0x22c] sm:$0xf]  ;;  %v4864_v42 = vld [vmem:[#allocation8 + $0x354] sm:$0xf0]  ;;  %v5293_v56 = vld [vmem:[#allocation10] sm:$0xf] }
 0x16d   :  { %2654 = vmatpush.bf16.msrb.mxu2 %v4252_v51  ;;  %v4380_v51 = vor.u32 %v4872_v48, %v4379_v47  ;;  %v4906_v53 = vld [vmem:[#allocation11 + $0xa8] sm:$0xff] }
 0x16e   :  { %v1716_v6 = vpop.f32.mrf.mxu1  ;;  %v1703_v13 = vadd.f32 %v1702_v40, %v1689_v2  ;;  %v4347_v40 = vld [vmem:[#allocation8 + $0x348] sm:$0xf]  ;;  %3008 = vmatpush.bf16.msrb.mxu3 %v4891_v8 }
 0x16f   :  { %v4348_v61 = vor.u32 %v4864_v42, %v4347_v40  ;;  %v4331_v2 = vld [vmem:[#allocation8 + $0x328] sm:$0xf]  ;;  %v1863_v40 = vperm.slane %v5293_v56, 0  ;;  %v4904_v42 = vld [vmem:[#allocation11 + $0x98] sm:$0xff] }
 0x170   :  { %v1717_v23 = vadd.f32 %v1716_v6, %v1703_v13  ;;  %v4315_v6 = vld [vmem:[#allocation8 + $0x308] sm:$0xf] }
 0x171   :  { %2655 = vmatpush.bf16.msrb.mxu2 %v4236_v59  ;;  %v1676_v11 = vpop.f32.mrf.mxu3  ;;  %v4205_v59 = vld [vmem:[#allocation8 + $0x238] sm:$0xf0] }
 0x172   :  { %v1677_v10 = vadd.f32 %v1676_v11, %v1663_v5  ;;  %v1690_v14 = vpop.f32.mrf.mxu2  ;;  %v1724_v21 = vmax.f32 %v1717_v23, 0.0  ;;  %v4208_v62 = vor.u32 %v4826_v58, %v4205_v59  ;;  %v4332_v5 = vor.u32 %v4860_v63, %v4331_v2  ;;  %v4856_v11 = vld [vmem:[#allocation8 + $0x314] sm:$0xf0]  ;;  %3009 = vmatpush.bf16.msrb.mxu3 %v4890_v34 }
 0x173   :  { %v4316_v13 = vor.u32 %v4856_v11, %v4315_v6  ;;  %v4903_v2 = vld [vmem:[#allocation11 + $0x90] sm:$0xff] }
 0x174   :  { %v1691_v16 = vadd.f32 %v1690_v14, %v1677_v10  ;;  %v4882_v10 = vld [vmem:[#allocation8 + $0x3ec] sm:$0xf] }
 0x175   :  { %2656 = vmatpush.bf16.msrb.mxu2 %v4220_v1  ;;  %v4189_v1 = vld [vmem:[#allocation8 + $0x218] sm:$0xf0] }
 0x176   :  { %v1705_v22 = vadd.f32 %v1704_v19, %v1691_v16  ;;  %v1718_v24 = vpop.f32.mrf.mxu1  ;;  %v4192_v3 = vor.u32 %v4822_v0, %v4189_v1  ;;  %v4416_v16 = vor.u32 %v4878_v15, %v4413_v35  ;;  %v4400_v19 = vor.u32 %v4874_v17, %v4397_v18  ;;  %3010 = vmatpush.bf16.msrb.mxu3 %v4889_v45  ;;  %v4901_v17 = vld [vmem:[#allocation11 + $0x80] sm:$0xff]  ;;  %v4916_v18 = vld [vmem:[#allocation11 + $0xf8] sm:$0xff] }
 0x178   :  { %v1719_v26 = vadd.f32 %v1718_v24, %v1705_v22  ;;  %v4870_v22 = vld [vmem:[#allocation8 + $0x38c] sm:$0xf]  ;;  %v4365_v24 = vld [vmem:[#allocation8 + $0x378] sm:$0xf0] }
 0x179   :  { %2657 = vmatpush.bf16.msrb.mxu2 %v4204_v12  ;;  %v4429_v12 = vld [vmem:[#allocation8 + $0x3f8] sm:$0xf0] }
 0x17a   :  { %v1728_v29 = vmax.f32 %v1719_v26, 0.0  ;;  %v4432_v14 = vor.u32 %v4882_v10, %v4429_v12 }
 0x17c   :  { %v5285_v33 = vpack.c.bf16 %v1728_v29, %v1724_v21  ;;  %v4336_v21 = vor.u32 %v4858_v50, %v4333_v28  ;;  %v4854_v29 = vld [vmem:[#allocation8 + $0x30c] sm:$0xf] }
 0x17d   :  { %2658 = vmatpush.bf16.msrb.mxu2 %v4188_v20  ;;  %v4381_v20 = vld [vmem:[#allocation8 + $0x398] sm:$0xf0] }
 0x17e   :  { %2561 = vmatmul.bf16.vlgmr.msrb.gmra.mxu0 %v5285_v33  ;;  %v4384_v23 = vor.u32 %v4870_v22, %v4381_v20 }
 0x17f   :  { %2665 = vmatpush.bf16.msrb.mxu0 %v4428_v31 }
 0x180   :  { %2659 = vmatmul.bf16.vlgmr.msrb.gmra.mxu2 %v5279_v27 }
 0x181   :  { %2707 = vmatpush.bf16.msra.mxu2 %v4304_v55  ;;  %v4866_v55 = vld [vmem:[#allocation8 + $0x36c] sm:$0xf] }
 0x182   :  { %v4368_v25 = vor.u32 %v4866_v55, %v4365_v24  ;;  %v4915_v55 = vld [vmem:[#allocation11 + $0xf0] sm:$0xff] }
 0x183   :  { %2666 = vmatpush.bf16.msrb.mxu0 %v4412_v38  ;;  %v4900_v38 = vld [vmem:[#allocation11 + $0x78] sm:$0xff] }
 0x184   :  { %3021 = vmatpush.bf16.msrb.mxu1 %v4900_v38 }
 0x185   :  { %2708 = vmatpush.bf16.msra.mxu2 %v4288_v30  ;;  %v4317_v30 = vld [vmem:[#allocation8 + $0x318] sm:$0xf0] }
 0x186   :  { %v4320_v31 = vor.u32 %v4854_v29, %v4317_v30  ;;  %v4913_v29 = vld [vmem:[#allocation11 + $0xe0] sm:$0xff] }
 0x187   :  { %2667 = vmatpush.bf16.msrb.mxu0 %v4396_v46  ;;  %v4896_v46 = vld [vmem:[#allocation11 + $0x58] sm:$0xff] }
 0x188   :  { %3022 = vmatpush.bf16.msrb.mxu1 %v4899_v41  ;;  %v4912_v41 = vld [vmem:[#allocation11 + $0xd8] sm:$0xff] }
 0x189   :  { %2709 = vmatpush.bf16.msra.mxu2 %v4272_v36  ;;  %v4888_v36 = vld [vmem:[#allocation11 + $0x18] sm:$0xff]  ;;  %v2520_v47 = vpop.f32.mrf.mxu3 }
 0x18a   :  { %3011 = vmatpush.bf16.msrb.mxu3 %v4888_v36 }
 0x18b   :  { %2668 = vmatpush.bf16.msrb.mxu0 %v4380_v51  ;;  %v4907_v51 = vld [vmem:[#allocation11 + $0xb0] sm:$0xff] }
 0x18c   :  { %3023 = vmatpush.bf16.msrb.mxu1 %v4898_v44 }
 0x18d   :  { %2710 = vmatpush.bf16.msra.mxu2 %v4256_v54  ;;  %v4897_v54 = vld [vmem:[#allocation11 + $0x60] sm:$0xff] }
 0x18e   :  { %2617 = vmatmul.bf16.vlgmr.msra.gmra.mxu0 %v5285_v33  ;;  %3012 = vmatpush.bf16.msrb.mxu3 %v4887_v39 }
 0x18f   :  { %2669 = vmatpush.bf16.msrb.mxu0 %v4364_v37  ;;  %v4905_v37 = vld [vmem:[#allocation11 + $0xa0] sm:$0xff] }
 0x190   :  { %3024 = vmatpush.bf16.msrb.mxu1 %v4897_v54 }
 0x191   :  { %2711 = vmatpush.bf16.msra.mxu2 %v4240_v49  ;;  %v4895_v49 = vld [vmem:[#allocation11 + $0x50] sm:$0xff]  ;;  %v2522_v58 = vpop.f32.mrf.mxu3 }
 0x192   :  { %3013 = vmatpush.bf16.msrb.mxu3 %v4886_v43  ;;  %v2523_v0 = vadd.f32 %v2522_v58, %v1863_v40  ;;  %v1865_v43 = vperm.slane %v5293_v56, 2 }
 0x193   :  { %2670 = vmatpush.bf16.msrb.mxu0 %v4348_v61  ;;  %v2521_v61 = vadd.f32 %v2520_v47, %v1863_v40 }
 0x194   :  { %3025 = vmatpush.bf16.msrb.mxu1 %v4896_v46 }
 0x195   :  { %2712 = vmatpush.bf16.msra.mxu2 %v4224_v57  ;;  %v4893_v57 = vld [vmem:[#allocation11 + $0x40] sm:$0xff] }
 0x197   :  { %2671 = vmatpush.bf16.msrb.mxu0 %v4332_v5 }
 0x198   :  { %3026 = vmatpush.bf16.msrb.mxu1 %v4895_v49  ;;  %v4910_v49 = vld [vmem:[#allocation11 + $0xc8] sm:$0xff] }
 0x199   :  { %2713 = vmatpush.bf16.msra.mxu2 %v4208_v62 }
 0x19b   :  { %2672 = vmatpush.bf16.msrb.mxu0 %v4316_v13  ;;  %v4902_v13 = vld [vmem:[#allocation11 + $0x88] sm:$0xff] }
 0x19c   :  { %3027 = vmatpush.bf16.msrb.mxu1 %v4894_v52 }
 0x19d   :  { %2714 = vmatpush.bf16.msra.mxu2 %v4192_v3 }
 0x19e   :  { %2673 = vmatmul.bf16.vlgmr.msrb.gmra.mxu0 %v5285_v33 }
 0x19f   :  { %2721 = vmatpush.bf16.msra.mxu0 %v4432_v14 }
 0x1a0   :  { %2715 = vmatmul.bf16.vlgmr.msra.gmra.mxu2 %v5279_v27  ;;  %v4862_v27 = vld [vmem:[#allocation8 + $0x34c] sm:$0xf]  ;;  %3028 = vmatpush.bf16.msrb.mxu1 %v4893_v57 }
 0x1a1   :  { %v4352_v26 = vor.u32 %v4862_v27, %v4349_v4  ;;  %v2534_v7 = vpop.f32.mrf.mxu1  ;;  %3035 = vmatpush.bf16.msrb.mxu2 %v4908_v9  ;;  %v4914_v4 = vld [vmem:[#allocation11 + $0xe8] sm:$0xff] }
 0x1a2   :  { %v2535_v1 = vadd.f32 %v2534_v7, %v2521_v61 }
 0x1a3   :  { %2722 = vmatpush.bf16.msra.mxu0 %v4416_v16 }
 0x1a5   :  { %3036 = vmatpush.bf16.msrb.mxu2 %v4907_v51 }
 0x1a7   :  { %2723 = vmatpush.bf16.msra.mxu0 %v4400_v19  ;;  %v1864_v19 = vperm.slane %v5293_v56, 1 }
 0x1a9   :  { %3037 = vmatpush.bf16.msrb.mxu2 %v4906_v53  ;;  %v2536_v60 = vpop.f32.mrf.mxu1  ;;  %v2576_v63 = vpop.f32.mrf.mxu3 }
 0x1aa   :  { %v2537_v5 = vadd.f32 %v2536_v60, %v2523_v0  ;;  %v2577_v27 = vadd.f32 %v2576_v63, %v1864_v19 }
 0x1ab   :  { %2724 = vmatpush.bf16.msra.mxu0 %v4384_v23 }
 0x1ad   :  { %3038 = vmatpush.bf16.msrb.mxu2 %v4905_v37  ;;  %v4909_v37 = vld [vmem:[#allocation11 + $0xc0] sm:$0xff] }
 0x1af   :  { %2725 = vmatpush.bf16.msra.mxu0 %v4368_v25 }
 0x1b1   :  { %3039 = vmatpush.bf16.msrb.mxu2 %v4904_v42  ;;  %v2590_v3 = vpop.f32.mrf.mxu1  ;;  %v2578_v20 = vpop.f32.mrf.mxu3 }
 0x1b2   :  { %v2591_v50 = vadd.f32 %v2590_v3, %v2577_v27 }
 0x1b3   :  { %2726 = vmatpush.bf16.msra.mxu0 %v4352_v26  ;;  %v2579_v26 = vadd.f32 %v2578_v20, %v1864_v19 }
 0x1b5   :  { %3040 = vmatpush.bf16.msrb.mxu2 %v4903_v2  ;;  %v1866_v2 = vperm.slane %v5293_v56, 3  ;;  %v4935_v56 = vld [vmem:[%s5314_s6] ss:$0 sm:$0xff]  ;;  %s5134_s6 = smov [#allocation13]  }
 0x1b6   :  { %s3115_s10 = sshll.u32 %s5134_s6, 4  ;;  %s3116_s10 = int_to_ptr.vmem [resolvable:$true] %s3115_s10 }
 0x1b7   :  { %2727 = vmatpush.bf16.msra.mxu0 %v4336_v21 }
 0x1b9   :  { %3041 = vmatpush.bf16.msrb.mxu2 %v4902_v13  ;;  %v2592_v23 = vpop.f32.mrf.mxu1 }
 0x1ba   :  { %v2593_v28 = vadd.f32 %v2592_v23, %v2579_v26 }
 0x1bb   :  { %2728 = vmatpush.bf16.msra.mxu0 %v4320_v31 }
 0x1bd   :  { %3042 = vmatpush.bf16.msrb.mxu2 %v4901_v17 }
 0x1be   :  { %2729 = vmatmul.bf16.vlgmr.msra.gmra.mxu0 %v5285_v33  ;;  %v4885_v33 = vld [vmem:[#allocation11] sm:$0xff] }
 0x1bf   :  { %3014 = vmatpush.bf16.msrb.mxu3 %v4885_v33  ;;  %3049 = vmatpush.bf16.msrb.mxu0 %v4916_v18  ;;  %v4911_v33 = vld [vmem:[#allocation11 + $0xd0] sm:$0xff] }
 0x1c2   :  { %v2646_v8 = vpop.f32.mrf.mxu1 }
 0x1c3   :  { %3050 = vmatpush.bf16.msrb.mxu0 %v4915_v55 }
 0x1c7   :  { %3051 = vmatpush.bf16.msrb.mxu0 %v4914_v4 }
 0x1c9   :  { %v2632_v30 = vpop.f32.mrf.mxu3 }
 0x1ca   :  { %v2633_v9 = vadd.f32 %v2632_v30, %v1865_v43  ;;  %v2648_v7 = vpop.f32.mrf.mxu1 }
 0x1cb   :  { %3052 = vmatpush.bf16.msrb.mxu0 %v4913_v29 }
 0x1cf   :  { %3053 = vmatpush.bf16.msrb.mxu0 %v4912_v41 }
 0x1d1   :  { %v2634_v54 = vpop.f32.mrf.mxu3 }
 0x1d2   :  { %v2635_v47 = vadd.f32 %v2634_v54, %v1865_v43 }
 0x1d3   :  { %3054 = vmatpush.bf16.msrb.mxu0 %v4911_v33 }
 0x1d4   :  { %v2649_v52 = vadd.f32 %v2648_v7, %v2635_v47 }
 0x1d7   :  { %3055 = vmatpush.bf16.msrb.mxu0 %v4910_v49 }
 0x1db   :  { %3056 = vmatpush.bf16.msrb.mxu0 %v4909_v37 }
 0x1dd   :  { %v2548_v48 = vpop.f32.mrf.mxu2 }
 0x1de   :  { %v2549_v6 = vadd.f32 %v2548_v48, %v2535_v1  ;;  %v2647_v48 = vadd.f32 %v2646_v8, %v2633_v9 }
 0x1e4   :  { %v2702_v0 = vpop.f32.mrf.mxu1 }
 0x1e5   :  { %v2550_v59 = vpop.f32.mrf.mxu2 }
 0x1e6   :  { %v2551_v10 = vadd.f32 %v2550_v59, %v2537_v5 }
 0x1e9   :  { %v2688_v61 = vpop.f32.mrf.mxu3 }
 0x1ea   :  { %v2689_v5 = vadd.f32 %v2688_v61, %v1866_v2 }
 0x1ed   :  { %v2604_v11 = vpop.f32.mrf.mxu2 }
 0x1ee   :  { %v2605_v21 = vadd.f32 %v2604_v11, %v2591_v50 }
 0x1f1   :  { %v2690_v63 = vpop.f32.mrf.mxu3 }
 0x1f2   :  { %v2691_v11 = vadd.f32 %v2690_v63, %v1866_v2 }
 0x1f5   :  { %v2606_v24 = vpop.f32.mrf.mxu2 }
 0x1f6   :  { %v2607_v31 = vadd.f32 %v2606_v24, %v2593_v28 }
 0x1fb   :  { %v2562_v62 = vpop.f32.mrf.mxu0 }
 0x1fc   :  { %v2563_v12 = vadd.f32 %v2562_v62, %v2549_v6  ;;  %v2704_v6 = vpop.f32.mrf.mxu1 }
 0x1fd   :  { %v2705_v13 = vadd.f32 %v2704_v6, %v2691_v11 }
 0x1fe   :  { %v2735_v35 = vmax.f32 %v2563_v12, 0.0 }
 0x203   :  { %v2564_v14 = vpop.f32.mrf.mxu0  ;;  %v2660_v36 = vpop.f32.mrf.mxu2 }
 0x204   :  { %v2565_v15 = vadd.f32 %v2564_v14, %v2551_v10  ;;  %v2661_v53 = vadd.f32 %v2660_v36, %v2647_v48  ;;  %v2703_v10 = vadd.f32 %v2702_v0, %v2689_v5 }
 0x206   :  { %v2739_v16 = vmax.f32 %v2565_v15, 0.0 }
 0x208   :  { %v2743_v22 = vpack.c.bf16 %v2739_v16, %v2735_v35 }
 0x20a   :  { %3015 = vmatmul.bf16.vlgmr.msrb.gmra.mxu3 %v2743_v22 }
 0x20b   :  { %v2618_v25 = vpop.f32.mrf.mxu0  ;;  %v2662_v51 = vpop.f32.mrf.mxu2 }
 0x20c   :  { %v2619_v32 = vadd.f32 %v2618_v25, %v2605_v21  ;;  %v2663_v60 = vadd.f32 %v2662_v51, %v2649_v52 }
 0x20e   :  { %v2736_v38 = vmax.f32 %v2619_v32, 0.0 }
 0x213   :  { %v2620_v34 = vpop.f32.mrf.mxu0 }
 0x214   :  { %v2621_v45 = vadd.f32 %v2620_v34, %v2607_v31 }
 0x216   :  { %v2740_v39 = vmax.f32 %v2621_v45, 0.0 }
 0x218   :  { %v2744_v44 = vpack.c.bf16 %v2740_v39, %v2736_v38 }
 0x21a   :  { %3029 = vmatmul.bf16.vlgmr.msrb.gmra.mxu1 %v2744_v44 }
 0x21b   :  { %v2674_v46 = vpop.f32.mrf.mxu0 }
 0x21c   :  { %v2675_v57 = vadd.f32 %v2674_v46, %v2661_v53 }
 0x21e   :  { %v2737_v40 = vmax.f32 %v2675_v57, 0.0 }
 0x223   :  { %v2676_v58 = vpop.f32.mrf.mxu0  ;;  %v2716_v1 = vpop.f32.mrf.mxu2 }
 0x224   :  { %v2677_v59 = vadd.f32 %v2676_v58, %v2663_v60  ;;  %v2717_v14 = vadd.f32 %v2716_v1, %v2703_v10 }
 0x226   :  { %v2741_v42 = vmax.f32 %v2677_v59, 0.0 }
 0x228   :  { %v2745_v62 = vpack.c.bf16 %v2741_v42, %v2737_v40 }
 0x22a   :  { %3043 = vmatmul.bf16.vlgmr.msrb.gmra.mxu2 %v2745_v62 }
 0x22b   :  { %v2718_v12 = vpop.f32.mrf.mxu2 }
 0x22c   :  { %v2719_v15 = vadd.f32 %v2718_v12, %v2705_v13 }
 0x23b   :  { %v2730_v3 = vpop.f32.mrf.mxu0 }
 0x23c   :  { %v2731_v35 = vadd.f32 %v2730_v3, %v2717_v14 }
 0x23e   :  { %v2738_v18 = vmax.f32 %v2731_v35, 0.0 }
 0x243   :  { %v2732_v16 = vpop.f32.mrf.mxu0 }
 0x244   :  { %v2733_v17 = vadd.f32 %v2732_v16, %v2719_v15 }
 0x246   :  { %v2742_v19 = vmax.f32 %v2733_v17, 0.0 }
 0x248   :  { %v2746_v22 = vpack.c.bf16 %v2742_v19, %v2738_v18 }
 0x24a   :  { %3057 = vmatmul.bf16.vlgmr.msrb.gmra.mxu0 %v2746_v22 }
 0x28d   :  { %v3016_v20 = vpop.f32.mrf.mxu3 }
 0x28e   :  { %v3017_v24 = vadd.f32 %v4935_v56, %v3016_v20 }
 0x295   :  { %v3018_v4 = vpop.f32.mrf.mxu3 }
 0x296   :  { %v3019_v21 = vadd.f32 %v4935_v56, %v3018_v4 }
 0x297   :  { %v3030_v23 = vpop.f32.mrf.mxu1 }
 0x298   :  { %v3031_v25 = vadd.f32 %v3030_v23, %v3017_v24 }
 0x29f   :  { %v3032_v28 = vpop.f32.mrf.mxu1 }
 0x2a0   :  { %v3033_v30 = vadd.f32 %v3032_v28, %v3019_v21 }
 0x2ad   :  { %v3044_v55 = vpop.f32.mrf.mxu2 }
 0x2ae   :  { %v3045_v27 = vadd.f32 %v3044_v55, %v3031_v25 }
 0x2b5   :  { %v3046_v29 = vpop.f32.mrf.mxu2 }
 0x2b6   :  { %v3047_v31 = vadd.f32 %v3046_v29, %v3033_v30 }
 0x2c7   :  { %v3058_v26 = vpop.f32.mrf.mxu0 }
 0x2c8   :  { %v3059_v50 = vadd.f32 %v3058_v26, %v3045_v27 }
 0x2ca   :  { %3063 = vmax.xlane.f32.xlu0 %v3059_v50 }
 0x2cf   :  { %v3060_v32 = vpop.f32.mrf.mxu0 }
 0x2d0   :  { %v3061_v8 = vadd.f32 %v3060_v32, %v3047_v31 }
 0x2d2   :  { %3065 = vmax.xlane.f32.xlu0 %v3061_v8 }
 0x33d   :  { %v3064_v34 = vpop.xlane.xlu0 %3063 }
 0x33e   :  { %v3067_v45 = vsub.f32 %v3059_v50, %v3064_v34 }
 0x340   :  { %v3069_v36 = vmul.f32 1.442695, %v3067_v45 }
 0x342   :  { %4936 = vpow2.f32 %v3069_v36 }
 0x345   :  { %v3066_v38 = vpop.xlane.xlu0 %3065 }
 0x346   :  { %v3068_v39 = vsub.f32 %v3061_v8, %v3066_v38 }
 0x348   :  { %v4937_v41 = vpop.eup %4936  ;;  %v3071_v43 = vmul.f32 1.442695, %v3068_v39 }
 0x349   :  { %3073 = vadd.xlane.f32.xlu1 %v4937_v41 }
 0x34a   :  { %4938 = vpow2.f32 %v3071_v43 }
 0x350   :  { %v4939_v44 = vpop.eup %4938 }
 0x351   :  { %3075 = vadd.xlane.f32.xlu1 %v4939_v44 }
 0x3bc   :  { %v3074_v33 = vpop.xlane.xlu1 %3073 }
 0x3bd   :  { %4940 = vrcp.f32 %v3074_v33  ;;  %v3088_v52 = vand.u32 2147483648, %v3074_v33  ;;  %vm3082_vm2 = vweird.f32 %v3074_v33  ;;  %v3086_v53 = vand.u32 2147483647, %v3074_v33 }
 0x3bf   :  { %v3089_v40 = vor.u32 1.1754944e-38, %v3088_v52  ;;  %vm3087_vm5 = vcmp.eq.f32.partialorder %v3086_v53, 8.507059e+37 }
 0x3c3   :  { %v4941_v54 = vpop.eup %4940 }
 0x3c4   :  { %v3078_v46 = vmul.f32 %v4941_v54, %v3074_v33  ;;  %v3076_v9 = vpop.xlane.xlu1 %3075  ;;  %vm3083_vm1 = vweird.f32 %v4941_v54 }
 0x3c5   :  { %4942 = vrcp.f32 %v3076_v9  ;;  %vm3084_vm3 = vmor %vm3082_vm2, %vm3083_vm1  ;;  %v3102_v57 = vand.u32 2147483648, %v3076_v9  ;;  %v3100_v58 = vand.u32 2147483647, %v3076_v9  ;;  %vm3096_vm6 = vweird.f32 %v3076_v9 }
 0x3c6   :  { %v3079_v7 = vsub.f32 1.0, %v3078_v46 }
 0x3c7   :  { %v3103_v62 = vor.u32 1.1754944e-38, %v3102_v57  ;;  %vm3101_vm8 = vcmp.eq.f32.partialorder %v3100_v58, 8.507059e+37 }
 0x3c8   :  { %v3080_v47 = vmul.f32 %v4941_v54, %v3079_v7 }
 0x3ca   :  { %v3081_v49 = vadd.f32 %v4941_v54, %v3080_v47 }
 0x3cb   :  { %v4943_v48 = vpop.eup %4942 }
 0x3cc   :  { %v3092_v51 = vmul.f32 %v4943_v48, %v3076_v9  ;;  %vm3097_vm4 = vweird.f32 %v4943_v48  ;;  %v3085_v59 = vsel %vm3084_vm3, %v4941_v54, %v3081_v49 }
 0x3cd   :  { %vm3098_vm7 = vmor %vm3096_vm6, %vm3097_vm4  ;;  %v3090_v61 = vsel %vm3087_vm5, %v3089_v40, %v3085_v59 }
 0x3ce   :  { %v3093_v60 = vsub.f32 1.0, %v3092_v51  ;;  %v3105_v2 = vmul.f32 %v4937_v41, %v3090_v61 }
 0x3d0   :  { %v3094_v37 = vmul.f32 %v4943_v48, %v3093_v60 }
 0x3d2   :  { %v3095_v42 = vadd.f32 %v4943_v48, %v3094_v37 }
 0x3d4   :  { %v3099_v0 = vsel %vm3098_vm7, %v4943_v48, %v3095_v42 }
 0x3d5   :  { %v3104_v1 = vsel %vm3101_vm8, %v3103_v62, %v3099_v0 }
 0x3d6   :  { %v3106_v63 = vmul.f32 %v4939_v44, %v3104_v1 }
 0x3d8   :  { %v4920_v3 = vpack.c.bf16 %v3106_v63, %v3105_v2 }
 0x3da   :  { %4921 = vst [vmem:[#allocation13] sm:$0xff] %v4920_v3  }
 0x3db   :  { %3123 = dma.vmem_to_hbm [thread:$0]  %s3116_s10, 128, %s3118_s13, [#allocation4], %s5132_s8, %s5132_s8, %s5133_s9  }
 0x3dc   :  { %5120 = dma.done.wait [#allocation4], 128  }
 0x3dd   :  { %5121 = vsyncadd [#allocation4], 4294967168 }
 0x3de   :  { %3128 = vsyncpa [#allocation3], 1 }
 0x3df   :  { %3129 = vsyncpa [#allocation6], 1 }
 0x3e0   :  { %3130 = vsyncpa [#allocation9], 1 }
 0x3e1   :  { %3131 = vsyncpa [#allocation12], 1 }
 0x3e2   :  { %3132 = vsyncpa [#allocation4], 1 }

</bundles_post_ra>
